<compile_context>
chip_gen: v6e
topology: v6e:2x2x1
jax: 0.10.0
libtpu: 0.0.40
codegen_flags: <defaults>
</compile_context>

<pallas_src>
import functools

import jax
import jax.numpy as jnp
from jax.experimental import pallas as pl
from jax.experimental.pallas import tpu as pltpu


# ----------------------------------------------------------------------------
# Glue: window partition / reverse (used only by the pure-JAX reference)
# ----------------------------------------------------------------------------
def window_partition(x, ps):
    # x: (B, T, H, W, C) -> (B * H/ps * W/ps, T, ps, ps, C)
    B, T, H, W, C = x.shape
    x = x.reshape(B, T, H // ps, ps, W // ps, ps, C)
    x = jnp.transpose(x, (0, 2, 4, 1, 3, 5, 6))
    return x.reshape(-1, T, ps, ps, C)


def window_reverse(windows, ps, H, W):
    # windows: (B * H/ps * W/ps, T, ps, ps, C) -> (B, T, H, W, C)
    wb, t, _, _, c = windows.shape
    B = wb // ((H // ps) * (W // ps))
    x = windows.reshape(B, H // ps, W // ps, t, ps, ps, c)
    x = jnp.transpose(x, (0, 3, 1, 4, 2, 5, 6))
    return x.reshape(B, t, H, W, c)


# ----------------------------------------------------------------------------
# Pallas kernel 1: residual 3x3 conv + bias + PReLU   (out = x + PReLU(conv(x)))
#   One image per grid step; halo built in a VMEM scratch (no HBM pad pass);
#   conv = 3 accumulated (n, 3C) @ (3C, C) matmuls (no (n, 9C) im2col temp).
# ----------------------------------------------------------------------------
def _conv3_prelu_res_kernel(x_ref, w_ref, b_ref, a_ref, o_ref, xpad_ref):
    # x_ref: (1, H, W, C)   w_ref: (9C, C)   b_ref: (1, C)   a_ref: (1,) SMEM
    # o_ref: (1, H, W, C)   xpad_ref: VMEM scratch (H+2, W+2, C)
    _, h, w, c = x_ref.shape
    n = h * w

    x = x_ref[0]                                              # (H, W, C)

    # Build the zero halo in VMEM (cheap VPU fill + interior copy).
    xpad_ref[...] = jnp.zeros_like(xpad_ref)
    xpad_ref[1:h + 1, 1:w + 1, :] = x.astype(xpad_ref.dtype)

    # 3x3 conv as 3 accumulated row-tap matmuls: (n, 3C) @ (3C, C).
    acc = jnp.zeros((n, c), jnp.float32)
    for ky in range(3):
        taps = jnp.concatenate(
            [xpad_ref[ky:ky + h, kx:kx + w, :].reshape(n, c).astype(jnp.float32)
             for kx in range(3)],
            axis=-1)                                          # (n, 3C)
        acc = acc + jnp.dot(
            taps, w_ref[ky * 3 * c:(ky + 1) * 3 * c, :].astype(jnp.float32),
            preferred_element_type=jnp.float32)

    acc = acc + b_ref[...].astype(jnp.float32)                # bias (1, C) broadcast
    alpha = a_ref[0]                                          # SMEM scalar
    acc = jnp.where(acc > 0, acc, alpha * acc)                # PReLU (single alpha)

    out = x.reshape(n, c).astype(jnp.float32) + acc           # residual
    o_ref[0] = out.reshape(h, w, c).astype(o_ref.dtype)


def conv3_prelu_residual(x_nhwc, w_flat, bias, alpha):
    """x_nhwc: (N, H, W, C); w_flat: (9*C, C) (HWIO flattened); bias: (C,); alpha scalar."""
    N, H, W, C = x_nhwc.shape
    bias2 = bias.reshape(1, C).astype(jnp.float32)
    alpha1 = jnp.asarray(alpha, jnp.float32).reshape(1)

    return pl.pallas_call(
        _conv3_prelu_res_kernel,
        out_shape=jax.ShapeDtypeStruct((N, H, W, C), x_nhwc.dtype),
        grid=(N,),
        in_specs=[
            pl.BlockSpec((1, H, W, C), lambda i: (i, 0, 0, 0)),
            pl.BlockSpec((9 * C, C), lambda i: (0, 0)),
            pl.BlockSpec((1, C), lambda i: (0, 0)),
            pl.BlockSpec(memory_space=pltpu.MemorySpace.SMEM),     # PReLU alpha
        ],
        out_specs=pl.BlockSpec((1, H, W, C), lambda i: (i, 0, 0, 0)),
        scratch_shapes=[pltpu.VMEM((H + 2, W + 2, C), jnp.float32)],
        compiler_params=pltpu.CompilerParams(
            dimension_semantics=("parallel",),
            vmem_limit_bytes=32 * 1024 * 1024),
    )(x_nhwc, w_flat, bias2, alpha1)


# ----------------------------------------------------------------------------
# Pallas kernel 2: dual windowed attention, blended by mask, residual fused.
#   Grid (batch, window); the window partition / reverse is done by the
#   BlockSpec index_maps.  Per step:
#     s1 = (q*scale) @ kvs^T ; s2 = (q*scale) @ kvw^T
#     o  = q + m*softmax(s1)@kvs + (1-m)*softmax(s2)@kvw
#   (the mask row->column broadcast is a diag(m) matmul on the idle MXU).
# ----------------------------------------------------------------------------
def _win_dual_attn_kernel(q_ref, kvs_ref, kvw_ref, m_ref, o_ref, *, nq, scale):
    # q_ref: (1, ps, ps, C)  kvs_ref: (t, ps, ps, C)  kvw_ref: (2t, ps, ps, C)
    # m_ref: (1, nwin, nq)   o_ref: (1, ps, ps, C)
    _, ps, _, c = q_ref.shape
    nk1 = kvs_ref.shape[0] * nq
    nk2 = kvw_ref.shape[0] * nq

    q = q_ref[...].reshape(nq, c).astype(jnp.float32)          # residual == q window
    k1 = kvs_ref[...].reshape(nk1, c).astype(jnp.float32)
    k2 = kvw_ref[...].reshape(nk2, c).astype(jnp.float32)

    def _softmax(x):
        x = x - jnp.max(x, axis=-1, keepdims=True)
        e = jnp.exp(x)
        return e * pl.reciprocal(jnp.sum(e, axis=-1, keepdims=True), approx=True)

    qs = q * scale
    s1 = jax.lax.dot_general(qs, k1, (((1,), (1,)), ((), ())),
                             preferred_element_type=jnp.float32)       # (nq, nk1)
    s2 = jax.lax.dot_general(qs, k2, (((1,), (1,)), ((), ())),
                             preferred_element_type=jnp.float32)       # (nq, nk2)
    o1 = jnp.dot(_softmax(s1), k1, preferred_element_type=jnp.float32)  # (nq, C)
    o2 = jnp.dot(_softmax(s2), k2, preferred_element_type=jnp.float32)  # (nq, C)

    # Mask blend: o = o2 + diag(m) @ (o1 - o2)  ==  m*o1 + (1-m)*o2.
    # diag(m) is built from the lane-laid mask row with iota+where (VPU) and the
    # row-wise scaling is done on the MXU -- no lane->sublane vreg relayout.
    wi = pl.program_id(1)
    m_row = m_ref[0, pl.ds(wi, 1), :].astype(jnp.float32)               # (1, nq)
    rows = jax.lax.broadcasted_iota(jnp.int32, (nq, nq), 0)
    cols = jax.lax.broadcasted_iota(jnp.int32, (nq, nq), 1)
    diag_m = jnp.where(rows == cols, m_row, 0.0)                        # (nq, nq)
    blend = jnp.dot(diag_m, o1 - o2, preferred_element_type=jnp.float32)

    out = q + o2 + blend                                                # fused residual
    o_ref[0] = out.reshape(ps, ps, c).astype(o_ref.dtype)


def windowed_dual_attention(q, kvs, kvw, mask_rows, ps, scale):
    """q: (b,h,w,c); kvs: (b*t,h,w,c); kvw: (b*2t,h,w,c); mask_rows: (b, nwin, ps*ps).

    Returns q + [mask * attn(q, kvs) + (1-mask) * attn(q, kvw)] in (b,h,w,c).
    """
    b, h, w, c = q.shape
    t1 = kvs.shape[0] // b
    t2 = kvw.shape[0] // b
    nwh, nww = h // ps, w // ps
    nwin = nwh * nww
    nq = ps * ps
    kernel = functools.partial(_win_dual_attn_kernel, nq=nq, scale=scale)

    win_idx = lambda i, wi: (i, wi // nww, wi % nww, 0)

    return pl.pallas_call(
        kernel,
        out_shape=jax.ShapeDtypeStruct((b, h, w, c), q.dtype),
        grid=(b, nwin),
        in_specs=[
            pl.BlockSpec((1, ps, ps, c), win_idx),
            pl.BlockSpec((t1, ps, ps, c), win_idx),
            pl.BlockSpec((t2, ps, ps, c), win_idx),
            # full per-image mask block: index constant in wi -> DMA'd only when
            # the batch index changes (no re-fetch across the 4 window steps).
            pl.BlockSpec((1, nwin, nq), lambda i, wi: (i, 0, 0)),
        ],
        out_specs=pl.BlockSpec((1, ps, ps, c), win_idx),
        compiler_params=pltpu.CompilerParams(
            dimension_semantics=("parallel", "parallel"),
            vmem_limit_bytes=32 * 1024 * 1024),
    )(q, kvs, kvw, mask_rows)


# ----------------------------------------------------------------------------
# FlowTransformerBlock forward (wrapper).  NCHW<->NHWC boundary transposes and
# the shift rolls stay as plain-JAX glue (see TODOs at the top).
# ----------------------------------------------------------------------------
def flow_transformer_block(inputs, params, patchsize=8, shift=False):
    xq, xkvw, xkv, em = inputs["xq"], inputs["xkvw"], inputs["xkv"], inputs["em"]
    b, t, c = inputs["b"], inputs["t"], inputs["c"]
    h, w = xq.shape[2], xq.shape[3]
    ps = patchsize
    ss = ps // 2
    nwh, nww = h // ps, w // ps

    to_nhwc = lambda x: jnp.transpose(x, (0, 2, 3, 1))
    to_nchw = lambda x: jnp.transpose(x, (0, 3, 1, 2))

    # embeddings: Q with emb_q (b steps); KV and KVw share emb_kv -> one fused
    # pallas_call with a 3*b*t-step grid (single launch, weights stay resident).
    Q = conv3_prelu_residual(to_nhwc(xq), *params["emb_q"])                # (b,h,w,c)
    kv_in = jnp.concatenate([to_nhwc(xkv), to_nhwc(xkvw)], axis=0)         # (b*3t,h,w,c)
    kv_out = conv3_prelu_residual(kv_in, *params["emb_kv"])
    KV = kv_out[:b * t]                                                    # (b*t,h,w,c)
    KVw = kv_out[b * t:]                                                   # (b*2t,h,w,c)

    Ms = em.reshape(b, h, w)
    Qs, KVs, KVws = Q, KV, KVw
    if shift:
        # TODO(synk): fold shift into attention index_map / pltpu.roll.
        Qs = jnp.roll(Qs, (-ss, -ss), axis=(1, 2))
        KVs = jnp.roll(KVs, (-ss, -ss), axis=(1, 2))
        KVws = jnp.roll(KVws, (-ss, -ss), axis=(1, 2))
        Ms = jnp.roll(Ms, (-ss, -ss), axis=(1, 2))

    # per-window mask rows (tiny wrapper glue): (b, nwin, ps*ps), queries in lanes.
    Mw = Ms.reshape(b, nwh, ps, nww, ps)
    Mw = jnp.transpose(Mw, (0, 1, 3, 2, 4)).reshape(b, nwh * nww, ps * ps)

    # attention kernel returns Qs + blended attention (residual fused in-kernel).
    attn_res = windowed_dual_attention(Qs, KVs, KVws, Mw, ps, float(c) ** (-0.5))

    if shift:
        attn_res = jnp.roll(attn_res, (ss, ss), axis=(1, 2))
    # attn_res == shortcut + windowed attention output (unshifted coordinates).

    Qout = conv3_prelu_residual(attn_res, *params["ff"])                   # feed_forward residual

    return {
        "xq": to_nchw(Qout),
        "xkvw": to_nchw(KVw),
        "xkv": to_nchw(KV),
        "em": em,
        "b": b, "t": t, "c": c,
    }


# ----------------------------------------------------------------------------
# Pure-JAX reference for correctness checking
# ----------------------------------------------------------------------------
def reference_forward(inputs, params, patchsize=8):
    xq, xkvw, xkv, em = inputs["xq"], inputs["xkvw"], inputs["xkv"], inputs["em"]
    b, t, c = inputs["b"], inputs["t"], inputs["c"]
    h, w = xq.shape[2], xq.shape[3]
    ps = patchsize

    def emb(x_nchw, p):
        w_flat, bias, alpha = p
        xn = jnp.transpose(x_nchw, (0, 2, 3, 1))
        y = jax.lax.conv_general_dilated(
            xn, w_flat.reshape(3, 3, c, c), (1, 1), "SAME",
            dimension_numbers=("NHWC", "HWIO", "NHWC")) + bias
        y = jnp.where(y > 0, y, alpha * y)
        return x_nchw + jnp.transpose(y, (0, 3, 1, 2))

    Q = emb(xq, params["emb_q"])
    KV = emb(xkv, params["emb_kv"])
    KVw = emb(xkvw, params["emb_kv"])
    shortcut = Q
    Qs = jnp.transpose(Q.reshape(b, 1, c, h, w), (0, 1, 3, 4, 2))
    KVs = jnp.transpose(KV.reshape(b, t, c, h, w), (0, 1, 3, 4, 2))
    KVws = jnp.transpose(KVw.reshape(b, 2 * t, c, h, w), (0, 1, 3, 4, 2))
    Masks = jnp.transpose(em.reshape(b, 1, 1, h, w), (0, 1, 3, 4, 2))
    Qw = window_partition(Qs, ps).reshape(-1, ps * ps, c)
    KVsw = window_partition(KVs, ps).reshape(-1, t * ps * ps, c)
    KVwsw = window_partition(KVws, ps).reshape(-1, 2 * t * ps * ps, c)
    Mw = window_partition(Masks, ps).reshape(-1, ps * ps, 1)
    scale = float(c) ** (-0.5)

    def attn(q, kv):
        s = (q * scale) @ jnp.swapaxes(kv, -2, -1)
        return jax.nn.softmax(s, axis=-1) @ kv

    out = Mw * attn(Qw, KVsw) + (1.0 - Mw) * attn(Qw, KVwsw)
    out = out.reshape(-1, 1, ps, ps, c)
    Qr = window_reverse(out, ps, h, w)
    Qq = shortcut + jnp.transpose(Qr, (0, 1, 4, 2, 3)).reshape(b, c, h, w)
    Qq = emb(Qq, params["ff"])
    return {"xq": Qq, "xkvw": KVw, "xkv": KV}


# ----------------------------------------------------------------------------
# Main
# ----------------------------------------------------------------------------
if __name__ == "__main__":
    b, t, hidden = 2, 2, 32
    h = w = 16
    patchsize = 8

    key = jax.random.PRNGKey(0)
    k_xq, k_kv, k_kvw, k_em, k_wq, k_wkv, k_wff = jax.random.split(key, 7)

    def conv_params(k):
        kw, kb = jax.random.split(k)
        whwio = jax.random.normal(kw, (3, 3, hidden, hidden), jnp.float32) * 0.05
        bias = jax.random.normal(kb, (hidden,), jnp.float32) * 0.05
        alpha = 0.25  # PReLU default init (single learnable alpha)
        return (whwio.reshape(9 * hidden, hidden), bias, alpha)

    params = {
        "emb_q": conv_params(k_wq),
        "emb_kv": conv_params(k_wkv),
        "ff": conv_params(k_wff),
    }

    inputs = {
        "xq": jax.random.normal(k_xq, (b, hidden, h, w), jnp.float32),
        "xkv": jax.random.normal(k_kv, (b * t, hidden, h, w), jnp.float32),
        "xkvw": jax.random.normal(k_kvw, (b * 2 * t, hidden, h, w), jnp.float32),
        "em": (jax.random.uniform(k_em, (b, 1, h, w)) > 0.5).astype(jnp.float32),
        "b": b, "t": t, "c": hidden,
    }

    out = flow_transformer_block(inputs, params, patchsize=patchsize, shift=False)
    out = jax.block_until_ready(out)

    ref = reference_forward(inputs, params, patchsize=patchsize)
    for name in ("xq", "xkv", "xkvw"):
        assert jnp.allclose(out[name], ref[name], rtol=5e-3, atol=5e-3), name

    print("KERNEL_OK")
</pallas_src>

<mosaic_0001>
module attributes {stable_mosaic.version = 11 : i64} {
  func.func @_conv3_prelu_res_kernel(%arg0: i32, %arg1: memref<1x16x16x32xf32, #tpu.memory_space<vmem>>, %arg2: memref<288x32xf32, #tpu.memory_space<vmem>>, %arg3: memref<1x32xf32, #tpu.memory_space<vmem>>, %arg4: memref<1xf32, #tpu.memory_space<smem>>, %arg5: memref<1x16x16x32xf32, #tpu.memory_space<vmem>>, %arg6: memref<18x18x32xf32, #tpu.memory_space<vmem>>) attributes {dimension_semantics = [#tpu.dimension_semantics<parallel>], iteration_bounds = array<i64: 2>, scalar_prefetch = 0 : i64, scratch_operands = 1 : i64, tpu.core_type = #tpu.core_type<tc>, window_params = [{transform_indices = @transform_0, window_bounds = array<i64: 1, 16, 16, 32>}, {pipeline_mode = #tpu.pipeline_mode<synchronous>, transform_indices = @transform_1, window_bounds = array<i64: 288, 32>}, {pipeline_mode = #tpu.pipeline_mode<synchronous>, transform_indices = @transform_2, window_bounds = array<i64: 1, 32>}, {transform_indices = @transform_3, window_bounds = array<i64: 1>}, {transform_indices = @transform_4, window_bounds = array<i64: 1, 16, 16, 32>}]} {
    %c0 = arith.constant 0 : index
    %c0_0 = arith.constant 0 : index
    %c0_1 = arith.constant 0 : index
    %c0_2 = arith.constant 0 : index
    %0 = vector.load %arg1[%c0, %c0_0, %c0_1, %c0_2] : memref<1x16x16x32xf32, #tpu.memory_space<vmem>>, vector<1x16x16x32xf32>
    %1 = vector.shape_cast %0 : vector<1x16x16x32xf32> to vector<16x16x32xf32>
    %cst = arith.constant 0.000000e+00 : f32
    %2 = vector.broadcast %cst : f32 to vector<18x18x32xf32>
    %c0_3 = arith.constant 0 : index
    %c0_4 = arith.constant 0 : index
    %c0_5 = arith.constant 0 : index
    %3 = vector.load %arg6[%c0_3, %c0_4, %c0_5] : memref<18x18x32xf32, #tpu.memory_space<vmem>>, vector<18x18x32xf32>
    tpu.vector_store %arg6[%c0_3, %c0_4, %c0_5], %2 {strides = array<i32>} : memref<18x18x32xf32, #tpu.memory_space<vmem>>, vector<18x18x32xf32>,
    %c1 = arith.constant 1 : index
    %c1_6 = arith.constant 1 : index
    %c0_7 = arith.constant 0 : index
    %4 = vector.load %arg6[%c1, %c1_6, %c0_7] : memref<18x18x32xf32, #tpu.memory_space<vmem>>, vector<16x16x32xf32>
    tpu.vector_store %arg6[%c1, %c1_6, %c0_7], %1 {strides = array<i32>} : memref<18x18x32xf32, #tpu.memory_space<vmem>>, vector<16x16x32xf32>,
    %cst_8 = arith.constant 0.000000e+00 : f32
    %5 = vector.broadcast %cst_8 : f32 to vector<256x32xf32>
    %c0_9 = arith.constant 0 : index
    %c0_10 = arith.constant 0 : index
    %c0_11 = arith.constant 0 : index
    %6 = vector.load %arg6[%c0_9, %c0_10, %c0_11] : memref<18x18x32xf32, #tpu.memory_space<vmem>>, vector<16x16x32xf32>
    %7 = vector.shape_cast %6 : vector<16x16x32xf32> to vector<256x32xf32>
    %c0_12 = arith.constant 0 : index
    %c1_13 = arith.constant 1 : index
    %c0_14 = arith.constant 0 : index
    %8 = vector.load %arg6[%c0_12, %c1_13, %c0_14] : memref<18x18x32xf32, #tpu.memory_space<vmem>>, vector<16x16x32xf32>
    %9 = vector.shape_cast %8 : vector<16x16x32xf32> to vector<256x32xf32>
    %c0_15 = arith.constant 0 : index
    %c2 = arith.constant 2 : index
    %c0_16 = arith.constant 0 : index
    %10 = vector.load %arg6[%c0_15, %c2, %c0_16] : memref<18x18x32xf32, #tpu.memory_space<vmem>>, vector<16x16x32xf32>
    %11 = vector.shape_cast %10 : vector<16x16x32xf32> to vector<256x32xf32>
    %12 = tpu.concatenate %7, %9, %11 in 1 : vector<256x32xf32>, vector<256x32xf32>, vector<256x32xf32> -> vector<256x96xf32>
    %c0_17 = arith.constant 0 : index
    %c0_18 = arith.constant 0 : index
    %13 = vector.load %arg2[%c0_17, %c0_18] : memref<288x32xf32, #tpu.memory_space<vmem>>, vector<96x32xf32>
    %cst_19 = arith.constant dense<0.000000e+00> : vector<256x32xf32>
    %14 = tpu.matmul %12, %13, %cst_19 {dimension_numbers = #tpu.dot_dimension_numbers<[1], [0], [0], [1], [0, 0, 1, 1], [], []>} : vector<256x96xf32>, vector<96x32xf32>, vector<256x32xf32> -> vector<256x32xf32>
    %15 = arith.addf %5, %14 : vector<256x32xf32>
    %c1_20 = arith.constant 1 : index
    %c0_21 = arith.constant 0 : index
    %c0_22 = arith.constant 0 : index
    %16 = vector.load %arg6[%c1_20, %c0_21, %c0_22] : memref<18x18x32xf32, #tpu.memory_space<vmem>>, vector<16x16x32xf32>
    %17 = vector.shape_cast %16 : vector<16x16x32xf32> to vector<256x32xf32>
    %c1_23 = arith.constant 1 : index
    %c1_24 = arith.constant 1 : index
    %c0_25 = arith.constant 0 : index
    %18 = vector.load %arg6[%c1_23, %c1_24, %c0_25] : memref<18x18x32xf32, #tpu.memory_space<vmem>>, vector<16x16x32xf32>
    %19 = vector.shape_cast %18 : vector<16x16x32xf32> to vector<256x32xf32>
    %c1_26 = arith.constant 1 : index
    %c2_27 = arith.constant 2 : index
    %c0_28 = arith.constant 0 : index
    %20 = vector.load %arg6[%c1_26, %c2_27, %c0_28] : memref<18x18x32xf32, #tpu.memory_space<vmem>>, vector<16x16x32xf32>
    %21 = vector.shape_cast %20 : vector<16x16x32xf32> to vector<256x32xf32>
    %22 = tpu.concatenate %17, %19, %21 in 1 : vector<256x32xf32>, vector<256x32xf32>, vector<256x32xf32> -> vector<256x96xf32>
    %c96 = arith.constant 96 : index
    %c0_29 = arith.constant 0 : index
    %23 = vector.load %arg2[%c96, %c0_29] : memref<288x32xf32, #tpu.memory_space<vmem>>, vector<96x32xf32>
    %cst_30 = arith.constant dense<0.000000e+00> : vector<256x32xf32>
    %24 = tpu.matmul %22, %23, %cst_30 {dimension_numbers = #tpu.dot_dimension_numbers<[1], [0], [0], [1], [0, 0, 1, 1], [], []>} : vector<256x96xf32>, vector<96x32xf32>, vector<256x32xf32> -> vector<256x32xf32>
    %25 = arith.addf %15, %24 : vector<256x32xf32>
    %c2_31 = arith.constant 2 : index
    %c0_32 = arith.constant 0 : index
    %c0_33 = arith.constant 0 : index
    %26 = vector.load %arg6[%c2_31, %c0_32, %c0_33] : memref<18x18x32xf32, #tpu.memory_space<vmem>>, vector<16x16x32xf32>
    %27 = vector.shape_cast %26 : vector<16x16x32xf32> to vector<256x32xf32>
    %c2_34 = arith.constant 2 : index
    %c1_35 = arith.constant 1 : index
    %c0_36 = arith.constant 0 : index
    %28 = vector.load %arg6[%c2_34, %c1_35, %c0_36] : memref<18x18x32xf32, #tpu.memory_space<vmem>>, vector<16x16x32xf32>
    %29 = vector.shape_cast %28 : vector<16x16x32xf32> to vector<256x32xf32>
    %c2_37 = arith.constant 2 : index
    %c2_38 = arith.constant 2 : index
    %c0_39 = arith.constant 0 : index
    %30 = vector.load %arg6[%c2_37, %c2_38, %c0_39] : memref<18x18x32xf32, #tpu.memory_space<vmem>>, vector<16x16x32xf32>
    %31 = vector.shape_cast %30 : vector<16x16x32xf32> to vector<256x32xf32>
    %32 = tpu.concatenate %27, %29, %31 in 1 : vector<256x32xf32>, vector<256x32xf32>, vector<256x32xf32> -> vector<256x96xf32>
    %c192 = arith.constant 192 : index
    %c0_40 = arith.constant 0 : index
    %33 = vector.load %arg2[%c192, %c0_40] : memref<288x32xf32, #tpu.memory_space<vmem>>, vector<96x32xf32>
    %cst_41 = arith.constant dense<0.000000e+00> : vector<256x32xf32>
    %34 = tpu.matmul %32, %33, %cst_41 {dimension_numbers = #tpu.dot_dimension_numbers<[1], [0], [0], [1], [0, 0, 1, 1], [], []>} : vector<256x96xf32>, vector<96x32xf32>, vector<256x32xf32> -> vector<256x32xf32>
    %35 = arith.addf %25, %34 : vector<256x32xf32>
    %c0_42 = arith.constant 0 : index
    %c0_43 = arith.constant 0 : index
    %36 = vector.load %arg3[%c0_42, %c0_43] : memref<1x32xf32, #tpu.memory_space<vmem>>, vector<1x32xf32>
    %37 = vector.broadcast %36 : vector<1x32xf32> to vector<256x32xf32>
    %38 = arith.addf %35, %37 : vector<256x32xf32>
    %c0_44 = arith.constant 0 : index
    %39 = memref.load %arg4[%c0_44] : memref<1xf32, #tpu.memory_space<smem>>
    %cst_45 = arith.constant 0.000000e+00 : f32
    %40 = vector.broadcast %cst_45 : f32 to vector<256x32xf32>
    %41 = arith.cmpf ogt, %38, %40 : vector<256x32xf32>
    %42 = vector.broadcast %39 : f32 to vector<256x32xf32>
    %43 = arith.mulf %42, %38 : vector<256x32xf32>
    %44 = arith.select %41, %38, %43 : vector<256x32xi1>, vector<256x32xf32>
    %45 = vector.shape_cast %1 : vector<16x16x32xf32> to vector<256x32xf32>
    %46 = arith.addf %45, %44 : vector<256x32xf32>
    %47 = vector.shape_cast %46 : vector<256x32xf32> to vector<16x16x32xf32>
    %c0_46 = arith.constant 0 : index
    %c0_47 = arith.constant 0 : index
    %c0_48 = arith.constant 0 : index
    %c0_49 = arith.constant 0 : index
    %48 = vector.load %arg5[%c0_46, %c0_47, %c0_48, %c0_49] : memref<1x16x16x32xf32, #tpu.memory_space<vmem>>, vector<1x16x16x32xf32>
    %49 = vector.shape_cast %48 : vector<1x16x16x32xf32> to vector<16x16x32xf32>
    %50 = vector.shape_cast %47 : vector<16x16x32xf32> to vector<1x16x16x32xf32>
    tpu.vector_store %arg5[%c0_46, %c0_47, %c0_48, %c0_49], %50 {strides = array<i32>} : memref<1x16x16x32xf32, #tpu.memory_space<vmem>>, vector<1x16x16x32xf32>,
    return
  }
  func.func @transform_0(%arg0: i32) -> (i32, i32, i32, i32) {
    %c0_i32 = arith.constant 0 : i32
    %c0_i32_0 = arith.constant 0 : i32
    %c0_i32_1 = arith.constant 0 : i32
    %c0_i32_2 = arith.constant 0 : i32
    return %arg0, %c0_i32, %c0_i32_0, %c0_i32_1 : i32, i32, i32, i32
  }
  func.func @transform_1(%arg0: i32) -> (i32, i32) {
    %c0_i32 = arith.constant 0 : i32
    %c0_i32_0 = arith.constant 0 : i32
    %c0_i32_1 = arith.constant 0 : i32
    return %c0_i32, %c0_i32_0 : i32, i32
  }
  func.func @transform_2(%arg0: i32) -> (i32, i32) {
    %c0_i32 = arith.constant 0 : i32
    %c0_i32_0 = arith.constant 0 : i32
    %c0_i32_1 = arith.constant 0 : i32
    return %c0_i32, %c0_i32_0 : i32, i32
  }
  func.func @transform_3(%arg0: i32) -> i32 {
    %c0_i32 = arith.constant 0 : i32
    %c0_i32_0 = arith.constant 0 : i32
    return %c0_i32 : i32
  }
  func.func @transform_4(%arg0: i32) -> (i32, i32, i32, i32) {
    %c0_i32 = arith.constant 0 : i32
    %c0_i32_0 = arith.constant 0 : i32
    %c0_i32_1 = arith.constant 0 : i32
    %c0_i32_2 = arith.constant 0 : i32
    return %arg0, %c0_i32, %c0_i32_0, %c0_i32_1 : i32, i32, i32, i32
  }
}

</mosaic_0001>

<bundles_post_ra>
// kernel: tpu_custom_call.1
= control target key start
LH: loop header
LB: loop body
LE: loop exit
PB: predicated region body
PF: predicated region fallthrough
CT: control target
= control target key end

     0   :  { %s5153_s0 = inlined_call_operand.hbm [shape: f32[2,16,16,32], index: 0, kind: input, shape index: {}]   ;;  %s5154_s1 = inlined_call_operand.vmem [shape: f32[288,32], index: 1, kind: input, shape index: {}]   ;;  %s5155_s2 = inlined_call_operand.vmem [shape: f32[1,32], index: 2, kind: input, shape index: {}]   ;;  %s5156_s3 = inlined_call_operand.<no memory space> [shape: f32[1], index: 3, kind: input, shape index: {}]   ;;  %s5157_s4 = inlined_call_operand.hbm [shape: f32[2,16,16,32], index: 4, kind: output, shape index: {}]  }
   0x1   :  { %9 = sst [smem:[#allocation3]] %s5156_s3 }
   0x2   :  { %10 = vsyncpa [#allocation5], 0 }
   0x3   :  { %12 = vsyncpa [#allocation5 + $0x1], 0 }
   0x4   :  { %13 = vsyncpa [#allocation6], 0 }
   0x5   :  { %15 = vsyncpa [#allocation6 + $0x1], 0  ;;  %s3577_s17 = smov 0   ;;  %s3579_s18 = smov 0  }
   0x6   :  { %s3581_s19 = smov 0   ;;  %s3583_s20 = smov 0  }
   0x7 LB: > { %s3598_s3 = sadd.s32 4294967295, %s3538_s20   ;;  %s2908_s21 = sadd.s32 4294967294, %s3538_s20   ;;  %s3538_s20 = sphi %s3583_s20, %s5244_s20   ;;  %s3534_s19 = sphi %s3581_s19, %s5243_s19   ;;  %s3530_s18 = sphi %s3579_s18, %s5242_s18   ;;  %s3526_s17 = sphi %s3577_s17, %s5241_s17  }
   0x8   : > { %s3602_s22 = sadd.s32 1, %s3538_s20   ;;  %s28_s23 = sadd.s32 1, %s3534_s19 }
   0x9   : > { %s25_s24 = ssub.s32 %s3538_s20, %s3602_s22  ;;  %p35_p0 = scmp.ne.s32.totalorder %s3534_s19, %s3530_s18 }
   0xa   : > { %p26_p1 = scmp.eq.s32.totalorder %s25_s24, 0  ;;  %p36_p2 = scmp.eq.s32.totalorder %s3538_s20, 0 }
   0xb   : > { %p41_p3 = scmp.ne.s32.totalorder %s3530_s18, %s3526_s17  ;;  %p42_p4 = scmp.eq.s32.totalorder %s3598_s3, 0 }
   0xc   : > { %s3614_s25 = scalar_select %p26_p1, %s3534_s19, %s28_s23  }
   0xd   : > { %p3616_p5 = por %p36_p2, %p35_p0  ;;  %p3620_p6 = por %p42_p4, %p41_p3 }
   0xe   : > { %p128_p7 = scmp.eq.s32.totalorder %s3598_s3, 1  ;;  %p134_p8 = scmp.eq.s32.totalorder %s2908_s21, 1 }
   0xf   : > { %s5185_s27 = scalar_select %p3620_p6, 1, 0 }
  0x10   : > { %p3405_p10 = scmp.lt.s32.totalorder %s3538_s20, 2  ;;  %p3627_p11 = por %p128_p7, %p35_p0 }
  0x11   : > { %p3631_p12 = por %p134_p8, %p41_p3  ;;  %s163_s30 = sand.u32 1, %s3534_s19  }
  0x12   : > { %s5186_s28 = scalar_select %p3627_p11, 1, 0 }
  0x13   : > { %s5187_s29 = scalar_select %p3631_p12, 1, 0 }
  0x14   : > { %s3019_s5 = sshll.u32 %s3538_s20, 12  ;;  %s2911_s6 = sshll.u32 %s163_s30, 8 }
  0x15   : > { %s3640_s9 = scalar_lea.hbm %s5153_s0, %s3019_s5  ;;  %s167_s10 = scalar_lea.vmem [#allocation4], %s2911_s6 }
  0x16   : > { %s174_s11 = sshll.u32 %s167_s10, 4  ;;  %p3644_p13 = pnand %p3405_p10, %p3616_p5  ;;  %s3648_s11 = int_to_ptr.vmem [resolvable:$true] %s174_s11 }
  0x17   : > { %s3650_s13 = scalar_lea.sflag [#allocation5], %s163_s30  ;;  %s3446_s14 = scalar_lea.hbm %s3640_s9, 4096 }
  0x18   : > { %p3447_p0 = scmp.ne.s32.totalorder %s3640_s9, %s3446_s14  ;;  %p3448_p1 = pneg %p3644_p13 }
  0x19   : > { %s3451_s21 = scalar_lea.hbm %s5153_s0, 8192  ;;  %p3452_p4 = scmp.lt.s32.totalorder %s3640_s9, %s5153_s0 }
  0x1a   : > { %p3449_p2 = pnand %p3448_p1, %p3447_p0  ;;  %p3453_p5 = scmp.lt.s32.totalorder %s3451_s21, %s3446_s14 }
  0x1c   : > { %p3450_p3 = pneg %p3449_p2  ;;  %p3454_p7 = por %p3453_p5, %p3452_p4 }
  0x1e   : > { %p3455_p8 = pnand %p3454_p7, %p3450_p3 }
  0x20   : > { %3458 = shalt.err (!%p3455_p8)
}
  0x21   : > { %s3459_s26 = scalar_lea.vmem %s3648_s11, 4096  ;;  %s3540_s30 = smov [#allocation4]  }
  0x22   : > { %p3460_p10 = scmp.ne.s32.totalorder %s3648_s11, %s3459_s26  ;;  %s3464_s5 = sshll.u32 %s3540_s30, 4  ;;  %s3465_s5 = int_to_ptr.vmem [resolvable:$false] %s3464_s5 }
  0x23   : > { %s3466_s6 = scalar_lea.vmem %s3465_s5, 8192  ;;  %p3467_p2 = scmp.lt.s32.totalorder %s3648_s11, %s3465_s5 }
  0x24   : > { %p3462_p9 = pnand %p3460_p10, %p3448_p1  ;;  %p3468_p12 = scmp.lt.s32.totalorder %s3466_s6, %s3459_s26 }
  0x26   : > { %p3463_p0 = pneg %p3462_p9  ;;  %p3469_p11 = por %p3468_p12, %p3467_p2 }
  0x28   : > { %p3470_p6 = pnand %p3469_p11, %p3463_p0 }
  0x2a   : > { %3473 = shalt.err (!%p3470_p6)
}
  0x2b   : > { %s3541_s7 = smov 128   ;;  %s3542_s8 = smov 8  }
  0x2c   : > { %3400 = dma.hbm_to_vmem [thread:$0]  (!%p3644_p13), %s3640_s9, 4096, %s3648_s11, %s3650_s13, %s3541_s7, %s3541_s7, %s3542_s8  }
  0x2d   : > { %p2914_p9 = scmp.ge.s32.totalorder %s3538_s20, 1  ;;  %p182_p1 = scmp.lt.s32.totalorder %s3538_s20, 3 }
  0x2f   : > { %p183_p3 = pnand %p2914_p9, %p182_p1 }
  0x31   : > { %186 = sbr.rel (%p183_p3) target bundleno = 808 (0x328), region = 36 }
  0x36   : > { %s3674_s10 = sand.u32 1, %s3530_s18   ;;  %p5189_p6 = scmp.ne.s32.totalorder %s5185_s27, 0 }
  0x37   : > { %s2915_s14 = sshll.u32 %s3674_s10, 8  ;;  %s189_s15 = scalar_lea.sflag [#allocation5], %s3674_s10 }
  0x38   : > { %s3680_s16 = scalar_lea.vmem [#allocation4], %s2915_s14 }
  0x39   : > { %3517 = dma.done.wait (%p5189_p6), %s189_s15, 4096  }
  0x3a   : > { %3519 = vsyncadd (%p5189_p6), %s189_s15, 4294963200  ;;  %vm249_vm0 = vcmask 261120   ;;  %vm252_vm1 = vcmask 254976   ;;  %v3543_v0 = vmov 0.0   ;;  %v3741_v1 = vld [vmem:[%s3680_s16] sm:$0xff]  ;;  %v3744_v2 = vld [vmem:[%s3680_s16 + $0x10] sm:$0xff] }
  0x3b   : > { %250 = vst.msk [vmem:[#allocation2] sm:$0xff] %vm249_vm0, %v3543_v0  ;;  %251 = vst.msk [vmem:[#allocation2 + $0x8] sm:$0xff] %vm249_vm0, %v3543_v0  ;;  %v3747_v3 = vld [vmem:[%s3680_s16 + $0x8] sm:$0xff]  ;;  %v3756_v6 = vld [vmem:[%s3680_s16 + $0x20] sm:$0xff]  ;;  %s3544_s27 = smov 32   ;;  %s3545_s30 = smov 64  }
  0x3c   : > { %254 = vst.msk [vmem:[#allocation2 + $0x18] sm:$0xff] %vm249_vm0, %v3543_v0  ;;  %255 = vst.msk [vmem:[#allocation2 + $0x20] sm:$0xff] %vm249_vm0, %v3543_v0  ;;  %v3762_v7 = vld [vmem:[%s3680_s16 + $0x18] sm:$0xff]  ;;  %v3765_v8 = vld [vmem:[%s3680_s16 + $0x30] sm:$0xff]  ;;  %vm722_vm2 = vcmask 523264   ;;  %vm1195_vm3 = vcmask 785408  }
  0x3d   : > { %257 = vst.msk [vmem:[#allocation2 + $0x30] sm:$0xff] %vm249_vm0, %v3543_v0  ;;  %258 = vst.msk [vmem:[#allocation2 + $0x38] sm:$0xff] %vm249_vm0, %v3543_v0  ;;  %v3768_v9 = vld [vmem:[%s3680_s16 + $0x28] sm:$0xff]  ;;  %v3777_v10 = vld [vmem:[%s3680_s16 + $0x40] sm:$0xff]  ;;  %s4902_s21 = scalar_lea.vmem [#allocation7], %s2915_s14  ;;  %s3020_s14 = sshll.u32 %s3598_s3, 12 }
  0x3e   : > { %260 = vst.msk [vmem:[#allocation2 + $0x48] sm:$0xff] %vm249_vm0, %v3543_v0  ;;  %261 = vst.msk [vmem:[#allocation2 + $0x50] sm:$0xff] %vm249_vm0, %v3543_v0  ;;  %v3780_v11 = vld [vmem:[%s3680_s16 + $0x38] sm:$0xff]  ;;  %v3783_v12 = vld [vmem:[%s3680_s16 + $0x80] sm:$0xff]  ;;  %s5103_s26 = scalar_lea.hbm %s5157_s4, %s3020_s14  ;;  %s2822_s3 = scalar_lea.sflag [#allocation6], %s3674_s10 }
  0x3f   : > { %263 = vst.msk [vmem:[#allocation2 + $0x60] sm:$0xff] %vm249_vm0, %v3543_v0  ;;  %264 = vst.msk [vmem:[#allocation2 + $0x68] sm:$0xff] %vm249_vm0, %v3543_v0  ;;  %v3792_v13 = vld [vmem:[%s3680_s16 + $0x48] sm:$0xff]  ;;  %v3798_v15 = vld [vmem:[%s3680_s16 + $0x90] sm:$0xff]  ;;  %p5238_p12 = scmp.ne.s32.totalorder %s5186_s28, 0  ;;  %s3546_s6 = smov [#allocation7]  }
  0x40   : > { %266 = vst.msk [vmem:[#allocation2 + $0x78] sm:$0xff] %vm249_vm0, %v3543_v0  ;;  %267 = vst.msk [vmem:[#allocation2 + $0x80] sm:$0xff] %vm249_vm0, %v3543_v0  ;;  %v3795_v14 = vld [vmem:[%s3680_s16 + $0x88] sm:$0xff]  ;;  %v3807_v16 = vld [vmem:[%s3680_s16 + $0x98] sm:$0xff]  ;;  %s3478_s7 = sshll.u32 %s3546_s6, 4  ;;  %s3479_s7 = int_to_ptr.vmem [resolvable:$false] %s3478_s7 }
  0x41   : > { %269 = vst.msk [vmem:[#allocation2 + $0x90] sm:$0xff] %vm249_vm0, %v3543_v0  ;;  %270 = vst.msk [vmem:[#allocation2 + $0x98] sm:$0xff] %vm249_vm0, %v3543_v0  ;;  %v3810_v17 = vld [vmem:[%s3680_s16 + $0xa0] sm:$0xff]  ;;  %v3813_v18 = vld [vmem:[%s3680_s16 + $0xa8] sm:$0xff]  ;;  %s3480_s8 = scalar_lea.vmem %s3479_s7, 8192 }
  0x42   : > { %272 = vst.msk [vmem:[#allocation2 + $0xa8] sm:$0xff] %vm249_vm0, %v3543_v0  ;;  %273 = vst.msk [vmem:[#allocation2 + $0xb0] sm:$0xff] %vm249_vm0, %v3543_v0  ;;  %v370_v4 = vld [vmem:[#allocation2 + $0x1] sm:$0xff]  ;;  %v3829_v21 = vld [vmem:[%s3680_s16 + $0xc0] sm:$0xff] }
  0x43   : > { %275 = vst.msk [vmem:[#allocation2 + $0xc0] sm:$0xff] %vm249_vm0, %v3543_v0  ;;  %276 = vst.msk [vmem:[#allocation2 + $0xc8] sm:$0xff] %vm249_vm0, %v3543_v0  ;;  %466 = vrot.lane.b32.xlu0 %v370_v4, %s3544_s27  ;;  %v3823_v19 = vld [vmem:[%s3680_s16 + $0xb0] sm:$0xff]  ;;  %v3826_v20 = vld [vmem:[%s3680_s16 + $0xb8] sm:$0xff] }
  0x44   : > { %278 = vst.msk [vmem:[#allocation2 + $0xd8] sm:$0xff] %vm249_vm0, %v3543_v0  ;;  %279 = vst.msk [vmem:[#allocation2 + $0xe0] sm:$0xff] %vm249_vm0, %v3543_v0  ;;  %v3838_v22 = vld [vmem:[%s3680_s16 + $0xc8] sm:$0xff]  ;;  %v3841_v23 = vld [vmem:[%s3680_s16 + $0xd0] sm:$0xff] }
  0x45   : > { %281 = vst.msk [vmem:[#allocation2 + $0xf0] sm:$0xff] %vm249_vm0, %v3543_v0  ;;  %282 = vst.msk [vmem:[#allocation2 + $0xf8] sm:$0xff] %vm249_vm0, %v3543_v0  ;;  %v3844_v24 = vld [vmem:[%s3680_s16 + $0xd8] sm:$0xff]  ;;  %v3887_v35 = vld [vmem:[%s3680_s16 + $0x50] sm:$0xff] }
  0x46   : > { %284 = vst.msk [vmem:[#allocation2 + $0x108] sm:$0xff] %vm249_vm0, %v3543_v0  ;;  %285 = vst.msk [vmem:[#allocation2 + $0x110] sm:$0xff] %vm249_vm0, %v3543_v0  ;;  %v3890_v36 = vld [vmem:[%s3680_s16 + $0x58] sm:$0xff]  ;;  %v3897_v37 = vld [vmem:[%s3680_s16 + $0xe0] sm:$0xff] }
  0x47   : > { %287 = vst.msk [vmem:[#allocation2 + $0x120] sm:$0xff] %vm249_vm0, %v3543_v0  ;;  %288 = vst.msk [vmem:[#allocation2 + $0x128] sm:$0xff] %vm249_vm0, %v3543_v0  ;;  %v1194_v38 = vld [vmem:[%s5154_s1 + $0xb8] sm:$0xff]  ;;  %v1193_v41 = vld [vmem:[%s5154_s1 + $0xb0] sm:$0xff] }
  0x48   : > { %290 = vst.msk [vmem:[#allocation2 + $0x138] sm:$0xff] %vm249_vm0, %v3543_v0  ;;  %291 = vst.msk [vmem:[#allocation2 + $0x140] sm:$0xff] %vm249_vm0, %v3543_v0  ;;  %v3907_v39 = vld [vmem:[%s3680_s16 + $0xe8] sm:$0xff]  ;;  %3369 = vmatprep.subr.mxu1 %v1194_v38  ;;  %v1192_v43 = vld [vmem:[%s5154_s1 + $0xa8] sm:$0xff]  ;;  %3153 = vmatprep.subr.mxu0 %v1194_v38 }
  0x49   : > { %293 = vst.msk [vmem:[#allocation2 + $0x150] sm:$0xff] %vm249_vm0, %v3543_v0  ;;  %294 = vst.msk [vmem:[#allocation2 + $0x158] sm:$0xff] %vm249_vm0, %v3543_v0  ;;  %3381 = vmatpush3.msra.mxu1 %v1194_v38  ;;  %v3921_v44 = vld [vmem:[%s3680_s16 + $0x60] sm:$0xff]  ;;  %v3924_v45 = vld [vmem:[%s3680_s16 + $0x68] sm:$0xff]  ;;  %3154 = vmatpush3.msra.mxu0 %v1194_v38 }
  0x4a   : > { %296 = vst.msk [vmem:[#allocation2 + $0x168] sm:$0xff] %vm249_vm0, %v3543_v0  ;;  %297 = vst.msk [vmem:[#allocation2 + $0x170] sm:$0xff] %vm249_vm0, %v3543_v0  ;;  %3370 = vmatprep.subr.mxu1 %v1193_v41  ;;  %v1191_v46 = vld [vmem:[%s5154_s1 + $0xa0] sm:$0xff]  ;;  %v1190_v49 = vld [vmem:[%s5154_s1 + $0x98] sm:$0xff]  ;;  %3155 = vmatprep.subr.mxu0 %v1193_v41 }
  0x4b   : > { %299 = vst.msk [vmem:[#allocation2 + $0x180] sm:$0xff] %vm249_vm0, %v3543_v0  ;;  %300 = vst.msk [vmem:[#allocation2 + $0x188] sm:$0xff] %vm249_vm0, %v3543_v0  ;;  %3382 = vmatpush3.msra.mxu1 %v1193_v41  ;;  %3156 = vmatpush3.msra.mxu0 %v1193_v41  ;;  %v1189_v50 = vld [vmem:[%s5154_s1 + $0x90] sm:$0xff]  ;;  %v3945_v51 = vld [vmem:[%s3680_s16 + $0xf0] sm:$0xff] }
  0x4c   : > { %302 = vst.msk [vmem:[#allocation2 + $0x198] sm:$0xff] %vm249_vm0, %v3543_v0  ;;  %303 = vst.msk [vmem:[#allocation2 + $0x1a0] sm:$0xff] %vm249_vm0, %v3543_v0  ;;  %3371 = vmatprep.subr.mxu1 %v1192_v43  ;;  %v3948_v52 = vld [vmem:[%s3680_s16 + $0xf8] sm:$0xff]  ;;  %3157 = vmatprep.subr.mxu0 %v1192_v43  ;;  %v1187_v55 = vld [vmem:[%s5154_s1 + $0x80] sm:$0xff] }
  0x4d   : > { %253 = vst.msk [vmem:[#allocation2 + $0x10] sm:$0x3] %vm252_vm1, %v3543_v0  ;;  %256 = vst.msk [vmem:[#allocation2 + $0x28] sm:$0x3] %vm252_vm1, %v3543_v0  ;;  %3383 = vmatpush3.msra.mxu1 %v1192_v43  ;;  %v1188_v54 = vld [vmem:[%s5154_s1 + $0x88] sm:$0xff]  ;;  %3158 = vmatpush3.msra.mxu0 %v1192_v43  ;;  %v3967_v56 = vld [vmem:[%s3680_s16 + $0x70] sm:$0xff] }
  0x4e   : > { %259 = vst.msk [vmem:[#allocation2 + $0x40] sm:$0x3] %vm252_vm1, %v3543_v0  ;;  %262 = vst.msk [vmem:[#allocation2 + $0x58] sm:$0x3] %vm252_vm1, %v3543_v0  ;;  %3372 = vmatprep.subr.mxu1 %v1191_v46  ;;  %v3970_v57 = vld [vmem:[%s3680_s16 + $0x78] sm:$0xff]  ;;  %3159 = vmatprep.subr.mxu0 %v1191_v46  ;;  %v1186_v59 = vld [vmem:[%s5154_s1 + $0x78] sm:$0xff] }
  0x4f   : > { %265 = vst.msk [vmem:[#allocation2 + $0x70] sm:$0x3] %vm252_vm1, %v3543_v0  ;;  %268 = vst.msk [vmem:[#allocation2 + $0x88] sm:$0x3] %vm252_vm1, %v3543_v0  ;;  %3384 = vmatpush3.msra.mxu1 %v1191_v46  ;;  %3160 = vmatpush3.msra.mxu0 %v1191_v46  ;;  %v1185_v61 = vld [vmem:[%s5154_s1 + $0x70] sm:$0xff]  ;;  %v1184_v63 = vld [vmem:[%s5154_s1 + $0x68] sm:$0xff] }
  0x50   : > { %271 = vst.msk [vmem:[#allocation2 + $0xa0] sm:$0x3] %vm252_vm1, %v3543_v0  ;;  %274 = vst.msk [vmem:[#allocation2 + $0xb8] sm:$0x3] %vm252_vm1, %v3543_v0  ;;  %3373 = vmatprep.subr.mxu1 %v1190_v49  ;;  %3161 = vmatprep.subr.mxu0 %v1190_v49  ;;  %s2835_s16 = sshll.u32 %s4902_s21, 4  ;;  %s5105_s16 = int_to_ptr.vmem [resolvable:$true] %s2835_s16 }
  0x51   : > { %277 = vst.msk [vmem:[#allocation2 + $0xd0] sm:$0x3] %vm252_vm1, %v3543_v0  ;;  %280 = vst.msk [vmem:[#allocation2 + $0xe8] sm:$0x3] %vm252_vm1, %v3543_v0  ;;  %3385 = vmatpush3.msra.mxu1 %v1190_v49  ;;  %3162 = vmatpush3.msra.mxu0 %v1190_v49  ;;  %s3474_s5 = scalar_lea.vmem %s5105_s16, 4096  ;;  %p3481_p5 = scmp.lt.s32.totalorder %s5105_s16, %s3479_s7 }
  0x52   : > { %283 = vst.msk [vmem:[#allocation2 + $0x100] sm:$0x3] %vm252_vm1, %v3543_v0  ;;  %286 = vst.msk [vmem:[#allocation2 + $0x118] sm:$0x3] %vm252_vm1, %v3543_v0  ;;  %3374 = vmatprep.subr.mxu1 %v1189_v50  ;;  %3163 = vmatprep.subr.mxu0 %v1189_v50  ;;  %p3475_p11 = scmp.ne.s32.totalorder %s5105_s16, %s3474_s5  ;;  %p3482_p7 = scmp.lt.s32.totalorder %s3480_s8, %s3474_s5 }
  0x53   : > { %289 = vst.msk [vmem:[#allocation2 + $0x130] sm:$0x3] %vm252_vm1, %v3543_v0  ;;  %292 = vst.msk [vmem:[#allocation2 + $0x148] sm:$0x3] %vm252_vm1, %v3543_v0  ;;  %3386 = vmatpush3.msra.mxu1 %v1189_v50  ;;  %3164 = vmatpush3.msra.mxu0 %v1189_v50 }
  0x54   : > { %295 = vst.msk [vmem:[#allocation2 + $0x160] sm:$0x3] %vm252_vm1, %v3543_v0  ;;  %298 = vst.msk [vmem:[#allocation2 + $0x178] sm:$0x3] %vm252_vm1, %v3543_v0  ;;  %v371_v5 = vld [vmem:[#allocation2 + $0x9] sm:$0xff]  ;;  %3375 = vmatprep.subr.mxu1 %v1188_v54  ;;  %3165 = vmatprep.subr.mxu0 %v1188_v54  ;;  %p3476_p13 = pnand %p3475_p11, %p5238_p12  ;;  %p3483_p8 = por %p3482_p7, %p3481_p5 }
  0x55   : > { %301 = vst.msk [vmem:[#allocation2 + $0x190] sm:$0x3] %vm252_vm1, %v3543_v0  ;;  %304 = vst.msk [vmem:[#allocation2 + $0x1a8] sm:$0x3] %vm252_vm1, %v3543_v0  ;;  %468 = vrot.lane.b32.xlu0 %v371_v5, %s3544_s27  ;;  %3387 = vmatpush3.msra.mxu1 %v1188_v54  ;;  %v1183_v5 = vld [vmem:[%s5154_s1 + $0x60] sm:$0xff] }
  0x56   : > { %306 = vst.msk [vmem:[#allocation2 + $0x19] sm:$0xff] %vm249_vm0, %v3741_v1  ;;  %308 = vst.msk [vmem:[#allocation2 + $0x31] sm:$0xff] %vm249_vm0, %v3744_v2  ;;  %3376 = vmatprep.subr.mxu1 %v1187_v55  ;;  %3166 = vmatpush3.msra.mxu0 %v1188_v54  ;;  %p3477_p4 = pneg %p3476_p13 }
  0x57   : > { %307 = vst.msk [vmem:[#allocation2 + $0x21] sm:$0xff] %vm249_vm0, %v3747_v3  ;;  %310 = vst.msk [vmem:[#allocation2 + $0x49] sm:$0xff] %vm249_vm0, %v3756_v6  ;;  %3388 = vmatpush3.msra.mxu1 %v1187_v55  ;;  %3167 = vmatprep.subr.mxu0 %v1187_v55 }
  0x58   : > { %309 = vst.msk [vmem:[#allocation2 + $0x39] sm:$0xff] %vm249_vm0, %v3762_v7  ;;  %312 = vst.msk [vmem:[#allocation2 + $0x61] sm:$0xff] %vm249_vm0, %v3765_v8  ;;  %3377 = vmatprep.subr.mxu1 %v1186_v59  ;;  %3168 = vmatpush3.msra.mxu0 %v1187_v55  ;;  %p3484_p10 = pnand %p3483_p8, %p3477_p4 }
  0x59   : > { %311 = vst.msk [vmem:[#allocation2 + $0x51] sm:$0xff] %vm249_vm0, %v3768_v9  ;;  %5190 = vst [vmem:[#allocation10_spill] sm:$0xff] %v3777_v10  ;;  %3389 = vmatpush3.msra.mxu1 %v1186_v59  ;;  %3169 = vmatprep.subr.mxu0 %v1186_v59 }
  0x5a   : > { %5191 = vst [vmem:[#allocation11_spill] sm:$0xff] %v3783_v12  ;;  %314 = vst.msk [vmem:[#allocation2 + $0x79] sm:$0xff] %vm249_vm0, %v3777_v10  ;;  %3378 = vmatprep.subr.mxu1 %v1185_v61  ;;  %3170 = vmatpush3.msra.mxu0 %v1186_v59 }
  0x5b   : > { %313 = vst.msk [vmem:[#allocation2 + $0x69] sm:$0xff] %vm249_vm0, %v3780_v11  ;;  %322 = vst.msk [vmem:[#allocation2 + $0xd9] sm:$0xff] %vm249_vm0, %v3783_v12  ;;  %3390 = vmatpush3.msra.mxu1 %v1185_v61  ;;  %3171 = vmatprep.subr.mxu0 %v1185_v61 }
  0x5c   : > { %5192 = vst [vmem:[#allocation12_spill] sm:$0xff] %v3792_v13  ;;  %5193 = vst [vmem:[#allocation13_spill] sm:$0xff] %v3795_v14  ;;  %3379 = vmatprep.subr.mxu1 %v1184_v63  ;;  %3172 = vmatpush3.msra.mxu0 %v1185_v61 }
  0x5d   : > { %5194 = vst [vmem:[#allocation14_spill] sm:$0xff] %v3798_v15  ;;  %315 = vst.msk [vmem:[#allocation2 + $0x81] sm:$0xff] %vm249_vm0, %v3792_v13  ;;  %v3846_v25 = vld [vmem:[#allocation2 + $0x19] sm:$0xff]  ;;  %v3848_v26 = vld [vmem:[#allocation2 + $0x31] sm:$0xff]  ;;  %3391 = vmatpush3.msra.mxu1 %v1184_v63  ;;  %3173 = vmatprep.subr.mxu0 %v1184_v63 }
  0x5e   : > { %323 = vst.msk [vmem:[#allocation2 + $0xe1] sm:$0xff] %vm249_vm0, %v3795_v14  ;;  %324 = vst.msk [vmem:[#allocation2 + $0xf1] sm:$0xff] %vm249_vm0, %v3798_v15  ;;  %470 = vrot.lane.b32.xlu1 %v3846_v25, %s3544_s27  ;;  %474 = vrot.lane.b32.xlu0 %v3848_v26, %s3544_s27  ;;  %v3860_v27 = vld [vmem:[#allocation2 + $0x21] sm:$0xff]  ;;  %v3862_v28 = vld [vmem:[#allocation2 + $0x49] sm:$0xff] }
  0x5f   : > { %5195 = vst [vmem:[#allocation15_spill] sm:$0xff] %v3807_v16  ;;  %5196 = vst [vmem:[#allocation16_spill] sm:$0xff] %v3810_v17  ;;  %v3868_v29 = vld [vmem:[#allocation2 + $0x39] sm:$0xff]  ;;  %v3870_v30 = vld [vmem:[#allocation2 + $0x61] sm:$0xff]  ;;  %3380 = vmatprep.subr.mxu1 %v1183_v5  ;;  %3174 = vmatpush3.msra.mxu0 %v1184_v63 }
  0x60   : > { %5197 = vst [vmem:[#allocation17_spill] sm:$0xff] %v3813_v18  ;;  %325 = vst.msk [vmem:[#allocation2 + $0xf9] sm:$0xff] %vm249_vm0, %v3807_v16  ;;  %v3876_v31 = vld [vmem:[#allocation2 + $0x51] sm:$0xff]  ;;  %v3950_v53 = vld [vmem:[#allocation2 + $0x1a] sm:$0xff]  ;;  %3392 = vmatpush3.msra.mxu1 %v1183_v5  ;;  %3175 = vmatprep.subr.mxu0 %v1183_v5 }
  0x61   : > { %326 = vst.msk [vmem:[#allocation2 + $0x109] sm:$0xff] %vm249_vm0, %v3810_v17  ;;  %327 = vst.msk [vmem:[#allocation2 + $0x111] sm:$0xff] %vm249_vm0, %v3813_v18  ;;  %v3878_v32 = vld [vmem:[#allocation2 + $0x79] sm:$0xff]  ;;  %v3972_v58 = vld [vmem:[#allocation2 + $0x22] sm:$0xff]  ;;  %3176 = vmatpush3.msra.mxu0 %v1183_v5 }
  0x62   : > { %5198 = vst [vmem:[#allocation18_spill] sm:$0xff] %v3823_v19  ;;  %5199 = vst [vmem:[#allocation19_spill] sm:$0xff] %v3826_v20  ;;  %472 = vrot.lane.b32.xlu1 %v3860_v27, %s3544_s27  ;;  %478 = vrot.lane.b32.xlu0 %v3862_v28, %s3544_s27  ;;  %v3884_v33 = vld [vmem:[#allocation2 + $0x69] sm:$0xff]  ;;  %v815_v34 = vld [vmem:[#allocation2 + $0xd9] sm:$0xff] }
  0x63   : > { %5200 = vst [vmem:[#allocation20_spill] sm:$0xff] %v3829_v21  ;;  %328 = vst.msk [vmem:[#allocation2 + $0x121] sm:$0xff] %vm249_vm0, %v3823_v19  ;;  %v4014_v43 = vld [vmem:[#allocation2 + $0x4a] sm:$0xff]  ;;  %v4020_v46 = vld [vmem:[#allocation2 + $0x52] sm:$0xff] }
  0x64   : > { %329 = vst.msk [vmem:[#allocation2 + $0x129] sm:$0xff] %vm249_vm0, %v3826_v20  ;;  %330 = vst.msk [vmem:[#allocation2 + $0x139] sm:$0xff] %vm249_vm0, %v3829_v21  ;;  %v3910_v40 = vld [vmem:[#allocation2 + $0x81] sm:$0xff]  ;;  %v4036_v55 = vld [vmem:[#allocation2 + $0x6a] sm:$0xff] }
  0x65   : > { %5201 = vst [vmem:[#allocation21_spill] sm:$0xff] %v3838_v22  ;;  %5202 = vst [vmem:[#allocation22_spill] sm:$0xff] %v3841_v23  ;;  %v847_v42 = vld [vmem:[#allocation2 + $0xda] sm:$0xff]  ;;  %v848_v48 = vld [vmem:[#allocation2 + $0xe2] sm:$0xff] }
  0x66   : > { %5203 = vst [vmem:[#allocation23_spill] sm:$0xff] %v3844_v24  ;;  %331 = vst.msk [vmem:[#allocation2 + $0x141] sm:$0xff] %vm249_vm0, %v3838_v22  ;;  %476 = vrot.lane.b32.xlu1 %v3868_v29, %s3544_s27  ;;  %482 = vrot.lane.b32.xlu0 %v3870_v30, %s3544_s27  ;;  %v816_v47 = vld [vmem:[#allocation2 + $0xe1] sm:$0xff]  ;;  %v817_v60 = vld [vmem:[#allocation2 + $0xf1] sm:$0xff] }
  0x67   : > { %332 = vst.msk [vmem:[#allocation2 + $0x151] sm:$0xff] %vm249_vm0, %v3841_v23  ;;  %333 = vst.msk [vmem:[#allocation2 + $0x159] sm:$0xff] %vm249_vm0, %v3844_v24  ;;  %v849_v62 = vld [vmem:[#allocation2 + $0xf2] sm:$0xff]  ;;  %v850_v4 = vld [vmem:[#allocation2 + $0xfa] sm:$0xff] }
  0x68   : > { %5204 = vst [vmem:[#allocation24_spill] sm:$0xff] %v3887_v35  ;;  %5205 = vst [vmem:[#allocation25_spill] sm:$0xff] %v3890_v36  ;;  %v818_v0 = vld [vmem:[#allocation2 + $0xf9] sm:$0xff]  ;;  %v851_v38 = vld [vmem:[#allocation2 + $0x10a] sm:$0xff] }
  0x69   : > { %316 = vst.msk [vmem:[#allocation2 + $0x91] sm:$0xff] %vm249_vm0, %v3887_v35  ;;  %317 = vst.msk [vmem:[#allocation2 + $0x99] sm:$0xff] %vm249_vm0, %v3890_v36  ;;  %v820_v41 = vld [vmem:[#allocation2 + $0x111] sm:$0xff]  ;;  %v4030_v54 = vld [vmem:[#allocation2 + $0x62] sm:$0xff] }
  0x6a   : > { %480 = vrot.lane.b32.xlu1 %v3876_v31, %s3544_s27  ;;  %486 = vrot.lane.b32.xlu0 %v3878_v32, %s3544_s27  ;;  %5206 = vst [vmem:[#allocation26_spill] sm:$0xff] %v3897_v37  ;;  %334 = vst.msk [vmem:[#allocation2 + $0x169] sm:$0xff] %vm249_vm0, %v3897_v37  ;;  %v4046_v63 = vld [vmem:[#allocation2 + $0x7a] sm:$0xff] }
  0x6b   : > { %5207 = vst [vmem:[#allocation27_spill] sm:$0xff] %v3907_v39  ;;  %335 = vst.msk [vmem:[#allocation2 + $0x171] sm:$0xff] %vm249_vm0, %v3907_v39  ;;  %v822_v49 = vld [vmem:[#allocation2 + $0x129] sm:$0xff]  ;;  %v823_v59 = vld [vmem:[#allocation2 + $0x139] sm:$0xff] }
  0x6c   : > { %5208 = vst [vmem:[#allocation28_spill] sm:$0xff] %v3921_v44  ;;  %5209 = vst [vmem:[#allocation29_spill] sm:$0xff] %v3924_v45  ;;  %v854_v50 = vld [vmem:[#allocation2 + $0x12a] sm:$0xff]  ;;  %v783_v19 = vld [vmem:[#allocation2 + $0xd8] sm:$0xff] }
  0x6d   : > { %318 = vst.msk [vmem:[#allocation2 + $0xa9] sm:$0xff] %vm249_vm0, %v3921_v44  ;;  %319 = vst.msk [vmem:[#allocation2 + $0xb1] sm:$0xff] %vm249_vm0, %v3924_v45  ;;  %v824_v61 = vld [vmem:[#allocation2 + $0x141] sm:$0xff] }
  0x6e   : > { %484 = vrot.lane.b32.xlu1 %v3884_v33, %s3544_s27  ;;  %927 = vrot.lane.b32.xlu0 %v815_v34, %s3544_s27  ;;  %5210 = vst [vmem:[#allocation30_spill] sm:$0xff] %v3945_v51  ;;  %5211 = vst [vmem:[#allocation31_spill] sm:$0xff] %v3948_v52  ;;  %v819_v34 = vld [vmem:[#allocation2 + $0x109] sm:$0xff]  ;;  %v857_v5 = vld [vmem:[#allocation2 + $0x152] sm:$0xff] }
  0x6f   : > { %336 = vst.msk [vmem:[#allocation2 + $0x181] sm:$0xff] %vm249_vm0, %v3945_v51  ;;  %337 = vst.msk [vmem:[#allocation2 + $0x189] sm:$0xff] %vm249_vm0, %v3948_v52 }
  0x70   : > { %5212 = vst [vmem:[#allocation32_spill] sm:$0xff] %v3967_v56  ;;  %5213 = vst [vmem:[#allocation33_spill] sm:$0xff] %v3970_v57 }
  0x71   : > { %320 = vst.msk [vmem:[#allocation2 + $0xc1] sm:$0xff] %vm249_vm0, %v3967_v56  ;;  %321 = vst.msk [vmem:[#allocation2 + $0xc9] sm:$0xff] %vm249_vm0, %v3970_v57  ;;  %v784_v56 = vld [vmem:[#allocation2 + $0xe0] sm:$0xff] }
  0x72   : > { %488 = vrot.lane.b32.xlu1 %v3910_v40, %s3544_s27  ;;  %1055 = vrot.lane.b32.xlu0 %v847_v42, %s3545_s30  ;;  %v852_v42 = vld [vmem:[#allocation2 + $0x112] sm:$0xff] }
  0x74   : > { %v4097_v52 = vld [vmem:[#allocation2 + $0xa9] sm:$0xff]  ;;  %v4119_v23 = vld [vmem:[#allocation2 + $0xb2] sm:$0xff] }
  0x75   : > { %v4101_v39 = vld [vmem:[#allocation2 + $0xaa] sm:$0xff] }
  0x76   : > { %929 = vrot.lane.b32.xlu1 %v816_v47, %s3544_s27  ;;  %1057 = vrot.lane.b32.xlu0 %v848_v48, %s3545_s30  ;;  %v821_v47 = vld [vmem:[#allocation2 + $0x121] sm:$0xff]  ;;  %v830_v15 = vld [vmem:[#allocation2 + $0x189] sm:$0xff] }
  0x77   : > { %v853_v48 = vld [vmem:[#allocation2 + $0x122] sm:$0xff]  ;;  %v862_v12 = vld [vmem:[#allocation2 + $0x18a] sm:$0xff] }
  0x78   : > { %v829_v21 = vld [vmem:[#allocation2 + $0x181] sm:$0xff] }
  0x79   : > { %v861_v20 = vld [vmem:[#allocation2 + $0x182] sm:$0xff] }
  0x7a   : > { %895 = vrot.lane.b32.xlu1 %v3846_v25, %s3544_s27  ;;  %1023 = vrot.lane.b32.xlu0 %v3950_v53, %s3545_s30  ;;  %v3998_v25 = vld [vmem:[#allocation2 + $0x32] sm:$0xff] }
  0x7e   : > { %897 = vrot.lane.b32.xlu1 %v3860_v27, %s3544_s27  ;;  %1025 = vrot.lane.b32.xlu0 %v3972_v58, %s3545_s30  ;;  %v4004_v27 = vld [vmem:[#allocation2 + $0x3a] sm:$0xff] }
  0x82   : > { %931 = vrot.lane.b32.xlu1 %v817_v60, %s3544_s27  ;;  %1059 = vrot.lane.b32.xlu0 %v849_v62, %s3545_s30  ;;  %v855_v60 = vld [vmem:[#allocation2 + $0x13a] sm:$0xff]  ;;  %v856_v62 = vld [vmem:[#allocation2 + $0x142] sm:$0xff] }
  0x86   : > { %933 = vrot.lane.b32.xlu1 %v818_v0, %s3544_s27  ;;  %1061 = vrot.lane.b32.xlu0 %v850_v4, %s3545_s30  ;;  %v4052_v0 = vld [vmem:[#allocation2 + $0x82] sm:$0xff]  ;;  %v825_v4 = vld [vmem:[#allocation2 + $0x151] sm:$0xff] }
  0x8a   : > { %899 = vrot.lane.b32.xlu1 %v3848_v26, %s3544_s27  ;;  %1027 = vrot.lane.b32.xlu0 %v3998_v25, %s3545_s30 }
  0x8e   : > { %901 = vrot.lane.b32.xlu1 %v3868_v29, %s3544_s27  ;;  %1029 = vrot.lane.b32.xlu0 %v4004_v27, %s3545_s30 }
  0x92   : > { %935 = vrot.lane.b32.xlu1 %v819_v34, %s3544_s27  ;;  %1063 = vrot.lane.b32.xlu0 %v851_v38, %s3545_s30  ;;  %v826_v34 = vld [vmem:[#allocation2 + $0x159] sm:$0xff] }
  0x93   : > { %v858_v38 = vld [vmem:[#allocation2 + $0x15a] sm:$0xff] }
  0x96   : > { %937 = vrot.lane.b32.xlu1 %v820_v41, %s3544_s27  ;;  %1065 = vrot.lane.b32.xlu0 %v852_v42, %s3545_s30  ;;  %v4062_v41 = vld [vmem:[#allocation2 + $0x91] sm:$0xff] }
  0x97   : > { %v4064_v42 = vld [vmem:[#allocation2 + $0x92] sm:$0xff] }
  0x9a   : > { %903 = vrot.lane.b32.xlu1 %v3862_v28, %s3544_s27  ;;  %1031 = vrot.lane.b32.xlu0 %v4014_v43, %s3545_s30 }
  0x9e   : > { %905 = vrot.lane.b32.xlu1 %v3876_v31, %s3544_s27  ;;  %1033 = vrot.lane.b32.xlu0 %v4020_v46, %s3545_s30 }
  0xa2   : > { %939 = vrot.lane.b32.xlu1 %v821_v47, %s3544_s27  ;;  %1067 = vrot.lane.b32.xlu0 %v853_v48, %s3545_s30  ;;  %v4072_v48 = vld [vmem:[#allocation2 + $0x99] sm:$0xff] }
  0xa6   : > { %941 = vrot.lane.b32.xlu1 %v822_v49, %s3544_s27  ;;  %1069 = vrot.lane.b32.xlu0 %v854_v50, %s3545_s30  ;;  %v4074_v49 = vld [vmem:[#allocation2 + $0x9a] sm:$0xff] }
  0xaa   : > { %907 = vrot.lane.b32.xlu1 %v3870_v30, %s3544_s27  ;;  %1035 = vrot.lane.b32.xlu0 %v4030_v54, %s3545_s30 }
  0xae   : > { %909 = vrot.lane.b32.xlu1 %v3884_v33, %s3544_s27  ;;  %1037 = vrot.lane.b32.xlu0 %v4036_v55, %s3545_s30 }
  0xb2   : > { %943 = vrot.lane.b32.xlu1 %v823_v59, %s3544_s27  ;;  %1071 = vrot.lane.b32.xlu0 %v855_v60, %s3545_s30  ;;  %v827_v59 = vld [vmem:[#allocation2 + $0x169] sm:$0xff] }
  0xb5   : > { %v4066_v47 = vpop.permute.xlu0 %466 }
  0xb6   : > { %945 = vrot.lane.b32.xlu1 %v824_v61, %s3544_s27  ;;  %1073 = vrot.lane.b32.xlu0 %v856_v62, %s3545_s30  ;;  %v859_v61 = vld [vmem:[#allocation2 + $0x16a] sm:$0xff] }
  0xba   : > { %911 = vrot.lane.b32.xlu1 %v3878_v32, %s3544_s27  ;;  %1039 = vrot.lane.b32.xlu0 %v4046_v63, %s3545_s30 }
  0xbe   : > { %913 = vrot.lane.b32.xlu1 %v3910_v40, %s3544_s27  ;;  %1041 = vrot.lane.b32.xlu0 %v4052_v0, %s3545_s30 }
  0xc2   : > { %947 = vrot.lane.b32.xlu1 %v825_v4, %s3544_s27  ;;  %1075 = vrot.lane.b32.xlu0 %v857_v5, %s3545_s30  ;;  %v766_v4 = vld [vmem:[%s5154_s1 + $0x58] sm:$0xff] }
  0xc3   : > { %3225 = vmatprep.subr.mxu1 %v766_v4  ;;  %v828_v5 = vld [vmem:[#allocation2 + $0x171] sm:$0xff] }
  0xc6   : > { %949 = vrot.lane.b32.xlu1 %v826_v34, %s3544_s27  ;;  %1077 = vrot.lane.b32.xlu0 %v858_v38, %s3545_s30  ;;  %v860_v38 = vld [vmem:[#allocation2 + $0x172] sm:$0xff] }
  0xc7   : > { %v4076_v50 = vpop.permute.xlu0 %468 }
  0xca   : > { %915 = vrot.lane.b32.xlu1 %v4062_v41, %s3544_s27  ;;  %1043 = vrot.lane.b32.xlu0 %v4064_v42, %s3545_s30 }
  0xce   : > { %917 = vrot.lane.b32.xlu1 %v4072_v48, %s3544_s27  ;;  %1045 = vrot.lane.b32.xlu0 %v4074_v49, %s3545_s30 }
  0xd0   : > { %v4082_v60 = vpop.permute.xlu1 %470  ;;  %v4084_v62 = vpop.permute.xlu0 %474 }
  0xd2   : > { %951 = vrot.lane.b32.xlu1 %v827_v59, %s3544_s27  ;;  %1079 = vrot.lane.b32.xlu0 %v859_v61, %s3545_s30  ;;  %v4108_v61 = vld [vmem:[%s5154_s1 + $0x118] sm:$0xff] }
  0xd3   : > { %3297 = vmatprep.subr.mxu0 %v4108_v61 }
  0xd4   : > { %v4091_v34 = vpop.permute.xlu1 %472  ;;  %v4093_v51 = vpop.permute.xlu0 %478 }
  0xd6   : > { %953 = vrot.lane.b32.xlu1 %v828_v5, %s3544_s27  ;;  %1081 = vrot.lane.b32.xlu0 %v860_v38, %s3545_s30  ;;  %v4115_v5 = vld [vmem:[#allocation2 + $0xb1] sm:$0xff] }
  0xd8   : > { %v4099_v37 = vpop.permute.xlu1 %476  ;;  %v4103_v59 = vpop.permute.xlu0 %482 }
  0xda   : > { %919 = vrot.lane.b32.xlu1 %v4097_v52, %s3544_s27  ;;  %1047 = vrot.lane.b32.xlu0 %v4101_v39, %s3545_s30 }
  0xdc   : > { %v4117_v38 = vpop.permute.xlu1 %480  ;;  %v4121_v24 = vpop.permute.xlu0 %486 }
  0xde   : > { %921 = vrot.lane.b32.xlu1 %v4115_v5, %s3544_s27  ;;  %1049 = vrot.lane.b32.xlu0 %v4119_v23, %s3545_s30 }
  0xe0   : > { %v4127_v22 = vpop.permute.xlu1 %484  ;;  %v928_v17 = vpop.permute.xlu0 %927 }
  0xe1   : > { %v1135_v18 = vsel %vm249_vm0, %v783_v19, %v928_v17  ;;  %v4140_v19 = vld [vmem:[#allocation2 + $0xc2] sm:$0xff] }
  0xe2   : > { %955 = vrot.lane.b32.xlu1 %v829_v21, %s3544_s27  ;;  %1083 = vrot.lane.b32.xlu0 %v861_v20, %s3545_s30  ;;  %v4138_v21 = vld [vmem:[#allocation2 + $0xc1] sm:$0xff] }
  0xe4   : > { %v4132_v16 = vpop.permute.xlu1 %488  ;;  %v1056_v14 = vpop.permute.xlu0 %1055 }
  0xe5   : > { %v1167_v57 = vsel %vm722_vm2, %v1135_v18, %v1056_v14  ;;  %v765_v14 = vld [vmem:[%s5154_s1 + $0x50] sm:$0xff] }
  0xe6   : > { %957 = vrot.lane.b32.xlu1 %v830_v15, %s3544_s27  ;;  %1085 = vrot.lane.b32.xlu0 %v862_v12, %s3545_s30  ;;  %v4152_v12 = vld [vmem:[#allocation2 + $0xc9] sm:$0xff]  ;;  %v4154_v15 = vld [vmem:[#allocation2 + $0x18] sm:$0xff] }
  0xe7   : > { %3201 = vmatprep.mubr.msk.f32.mxu1 %vm1195_vm3, %v1167_v57 }
  0xe8   : > { %v930_v17 = vpop.permute.xlu1 %929  ;;  %v1058_v44 = vpop.permute.xlu0 %1057 }
  0xe9   : > { %v1136_v20 = vsel %vm249_vm0, %v784_v56, %v930_v17  ;;  %v402_v56 = vld [vmem:[#allocation2 + $0x2] sm:$0xff] }
  0xea   : > { %v1168_v45 = vsel %vm722_vm2, %v1136_v20, %v1058_v44  ;;  %923 = vrot.lane.b32.xlu1 %v4138_v21, %s3544_s27  ;;  %1051 = vrot.lane.b32.xlu0 %v4140_v19, %s3545_s30  ;;  %v764_v17 = vld [vmem:[%s5154_s1 + $0x48] sm:$0xff]  ;;  %v763_v20 = vld [vmem:[%s5154_s1 + $0x40] sm:$0xff] }
  0xeb   : > { %3202 = vmatmul.mubr.msk.f32.vlgmr.msra.gmra.mxu1 %vm1195_vm3, %v1168_v45 }
  0xec   : > { %v896_v18 = vpop.permute.xlu1 %895  ;;  %3226 = vmatpush3.msra.mxu1 %v766_v4  ;;  %v1024_v57 = vpop.permute.xlu0 %1023  ;;  %v4166_v4 = vld [vmem:[#allocation2 + $0xca] sm:$0xff] }
  0xed   : > { %v1119_v44 = vsel %vm249_vm0, %v4154_v15, %v896_v18  ;;  %3227 = vmatprep.subr.mxu1 %v765_v14  ;;  %v4171_v18 = vld [vmem:[#allocation2 + $0x20] sm:$0xff] }
  0xee   : > { %925 = vrot.lane.b32.xlu1 %v4152_v12, %s3544_s27  ;;  %v1151_v45 = vsel %vm722_vm2, %v1119_v44, %v1024_v57  ;;  %3228 = vmatpush3.msra.mxu1 %v765_v14  ;;  %v762_v44 = vld [vmem:[%s5154_s1 + $0x38] sm:$0xff]  ;;  %v2265_v57 = vld [vmem:[%s5154_s1 + $0x110] sm:$0xff] }
  0xef   : > { %594 = vrot.lane.b32.xlu0 %v402_v56, %s3545_s30  ;;  %3177 = vmatprep.mubr.msk.f32.mxu0 %vm1195_vm3, %v1151_v45  ;;  %v785_v56 = vld [vmem:[#allocation2 + $0xf0] sm:$0xff] }
  0xf0   : > { %v898_v35 = vpop.permute.xlu1 %897  ;;  %3229 = vmatprep.subr.mxu1 %v764_v17  ;;  %v1026_v10 = vpop.permute.xlu0 %1025  ;;  %v761_v45 = vld [vmem:[%s5154_s1 + $0x30] sm:$0xff] }
  0xf1   : > { %v1120_v36 = vsel %vm249_vm0, %v4171_v18, %v898_v35  ;;  %3230 = vmatpush3.msra.mxu1 %v764_v17  ;;  %v403_v35 = vld [vmem:[#allocation2 + $0xa] sm:$0xff] }
  0xf2   : > { %v1152_v14 = vsel %vm722_vm2, %v1120_v36, %v1026_v10  ;;  %1053 = vrot.lane.b32.xlu1 %v4166_v4, %s3545_s30  ;;  %3231 = vmatprep.subr.mxu1 %v763_v20 }
  0xf3   : > { %1967 = vrot.lane.b32.xlu0 %v3848_v26, %s3544_s27  ;;  %3178 = vmatmul.mubr.msk.f32.vlgmr.msra.gmra.mxu0 %vm1195_vm3, %v1152_v14  ;;  %v786_v26 = vld [vmem:[#allocation2 + $0xf8] sm:$0xff] }
  0xf4   : > { %v932_v10 = vpop.permute.xlu1 %931  ;;  %3232 = vmatpush3.msra.mxu1 %v763_v20  ;;  %3298 = vmatpush3.msra.mxu0 %v4108_v61  ;;  %v1060_v17 = vpop.permute.xlu0 %1059  ;;  %v2264_v20 = vld [vmem:[%s5154_s1 + $0x108] sm:$0xff] }
  0xf5   : > { %v1137_v36 = vsel %vm249_vm0, %v785_v56, %v932_v10  ;;  %3233 = vmatprep.subr.mxu1 %v762_v44  ;;  %3299 = vmatprep.subr.mxu0 %v2265_v57  ;;  %v760_v61 = vld [vmem:[%s5154_s1 + $0x28] sm:$0xff]  ;;  %v2263_v10 = vld [vmem:[%s5154_s1 + $0x100] sm:$0xff] }
  0xf6   : > { %v1169_v13 = vsel %vm722_vm2, %v1137_v36, %v1060_v17  ;;  %596 = vrot.lane.b32.xlu1 %v403_v35, %s3545_s30  ;;  %3234 = vmatpush3.msra.mxu1 %v762_v44 }
  0xf7   : > { %2095 = vrot.lane.b32.xlu0 %v3998_v25, %s3545_s30  ;;  %3204 = vmatprep.mubr.msk.f32.mxu1 %vm1195_vm3, %v1169_v13  ;;  %v759_v13 = vld [vmem:[%s5154_s1 + $0x20] sm:$0xff] }
  0xf8   : > { %v934_v14 = vpop.permute.xlu1 %933  ;;  %3235 = vmatprep.subr.mxu1 %v761_v45  ;;  %3300 = vmatpush3.msra.mxu0 %v2265_v57  ;;  %v1062_v35 = vpop.permute.xlu0 %1061  ;;  %v4216_v57 = vld [vmem:[#allocation2 + $0x30] sm:$0xff] }
  0xf9   : > { %v1138_v56 = vsel %vm249_vm0, %v786_v26, %v934_v14  ;;  %3236 = vmatpush3.msra.mxu1 %v761_v45  ;;  %3301 = vmatprep.subr.mxu0 %v2264_v20  ;;  %v758_v45 = vld [vmem:[%s5154_s1 + $0x18] sm:$0xff] }
  0xfa   : > { %v1170_v44 = vsel %vm722_vm2, %v1138_v56, %v1062_v35  ;;  %1969 = vrot.lane.b32.xlu1 %v3868_v29, %s3544_s27  ;;  %3237 = vmatprep.subr.mxu1 %v760_v61  ;;  %v757_v35 = vld [vmem:[%s5154_s1 + $0x10] sm:$0xff] }
  0xfb   : > { %598 = vrot.lane.b32.xlu0 %v3950_v53, %s3545_s30  ;;  %3205 = vmatmul.mubr.msk.f32.gmra.mxu1 %vm1195_vm3, %v1170_v44  ;;  %v2262_v53 = vld [vmem:[%s5154_s1 + $0xf8] sm:$0xff] }
  0xfc   : > { %v900_v36 = vpop.permute.xlu1 %899  ;;  %3238 = vmatpush3.msra.mxu1 %v760_v61  ;;  %3302 = vmatpush3.msra.mxu0 %v2264_v20  ;;  %v1028_v17 = vpop.permute.xlu0 %1027  ;;  %v4232_v20 = vld [vmem:[#allocation2 + $0x38] sm:$0xff] }
  0xfd   : > { %v1121_v29 = vsel %vm249_vm0, %v4216_v57, %v900_v36  ;;  %3239 = vmatprep.subr.mxu1 %v759_v13  ;;  %3303 = vmatprep.subr.mxu0 %v2263_v10 }
  0xfe   : > { %v1153_v26 = vsel %vm722_vm2, %v1121_v29, %v1028_v17  ;;  %2097 = vrot.lane.b32.xlu1 %v4004_v27, %s3545_s30  ;;  %3240 = vmatpush3.msra.mxu1 %v759_v13  ;;  %v787_v13 = vld [vmem:[#allocation2 + $0x108] sm:$0xff] }
  0xff   : > { %1971 = vrot.lane.b32.xlu0 %v3862_v28, %s3544_s27  ;;  %3180 = vmatprep.mubr.msk.f32.mxu0 %vm1195_vm3, %v1153_v26  ;;  %v2261_v28 = vld [vmem:[%s5154_s1 + $0xf0] sm:$0xff] }
 0x100   : > { %v902_v61 = vpop.permute.xlu1 %901  ;;  %3304 = vmatpush3.msra.mxu0 %v2263_v10  ;;  %3241 = vmatprep.subr.mxu1 %v758_v45  ;;  %v1030_v56 = vpop.permute.xlu0 %1029  ;;  %v756_v10 = vld [vmem:[%s5154_s1 + $0x8] sm:$0xff]  ;;  %v788_v26 = vld [vmem:[#allocation2 + $0x110] sm:$0xff] }
 0x101   : > { %v1122_v14 = vsel %vm249_vm0, %v4232_v20, %v902_v61  ;;  %3305 = vmatprep.subr.mxu0 %v2262_v53  ;;  %3242 = vmatpush3.msra.mxu1 %v758_v45  ;;  %v2259_v61 = vld [vmem:[%s5154_s1 + $0xe0] sm:$0xff] }
 0x102   : > { %v1154_v44 = vsel %vm722_vm2, %v1122_v14, %v1030_v56  ;;  %600 = vrot.lane.b32.xlu1 %v3972_v58, %s3545_s30  ;;  %3306 = vmatpush3.msra.mxu0 %v2262_v53  ;;  %v2260_v58 = vld [vmem:[%s5154_s1 + $0xe8] sm:$0xff]  ;;  %v755_v53 = vld [vmem:[%s5154_s1] sm:$0xff] }
 0x103   : > { %2099 = vrot.lane.b32.xlu0 %v4014_v43, %s3545_s30  ;;  %3181 = vmatmul.mubr.msk.f32.gmra.mxu0 %vm1195_vm3, %v1154_v44 }
 0x104   : > { %v936_v36 = vpop.permute.xlu1 %935  ;;  %3243 = vmatprep.subr.mxu1 %v757_v35  ;;  %3307 = vmatprep.subr.mxu0 %v2261_v28  ;;  %v1064_v17 = vpop.permute.xlu0 %1063 }
 0x105   : > { %v1139_v29 = vsel %vm249_vm0, %v787_v13, %v936_v36  ;;  %3244 = vmatpush3.msra.mxu1 %v757_v35  ;;  %3308 = vmatpush3.msra.mxu0 %v2261_v28  ;;  %v4277_v28 = vld [vmem:[#allocation2 + $0x48] sm:$0xff]  ;;  %v2257_v36 = vld [vmem:[%s5154_s1 + $0xd0] sm:$0xff] }
 0x106   : > { %v1171_v45 = vsel %vm722_vm2, %v1139_v29, %v1064_v17  ;;  %1973 = vrot.lane.b32.xlu1 %v3876_v31, %s3544_s27  ;;  %3245 = vmatprep.subr.mxu1 %v756_v10  ;;  %v4293_v17 = vld [vmem:[#allocation2 + $0x50] sm:$0xff] }
 0x107   : > { %602 = vrot.lane.b32.xlu0 %v3998_v25, %s3545_s30  ;;  %3207 = vmatprep.mubr.msk.f32.mxu1 %vm1195_vm3, %v1171_v45  ;;  %v2258_v25 = vld [vmem:[%s5154_s1 + $0xd8] sm:$0xff] }
 0x108   : > { %v938_v14 = vpop.permute.xlu1 %937  ;;  %3309 = vmatprep.subr.mxu0 %v2260_v58  ;;  %3246 = vmatpush3.msra.mxu1 %v756_v10  ;;  %v1066_v56 = vpop.permute.xlu0 %1065 }
 0x109   : > { %v1140_v31 = vsel %vm249_vm0, %v788_v26, %v938_v14  ;;  %3310 = vmatpush3.msra.mxu0 %v2260_v58  ;;  %3247 = vmatprep.subr.mxu1 %v755_v53 }
 0x10a   : > { %v1172_v35 = vsel %vm722_vm2, %v1140_v31, %v1066_v56  ;;  %2101 = vrot.lane.b32.xlu1 %v4020_v46, %s3545_s30  ;;  %3311 = vmatprep.subr.mxu0 %v2259_v61 }
 0x10b   : > { %1975 = vrot.lane.b32.xlu0 %v3870_v30, %s3544_s27  ;;  %3208 = vmatmul.mubr.msk.f32.gmra.mxu1 %vm1195_vm3, %v1172_v35  ;;  %v2256_v30 = vld [vmem:[%s5154_s1 + $0xc8] sm:$0xff] }
 0x10c   : > { %v904_v44 = vpop.permute.xlu1 %903  ;;  %3248 = vmatpush3.msra.mxu1 %v755_v53  ;;  %3312 = vmatpush3.msra.mxu0 %v2259_v61  ;;  %v1032_v10 = vpop.permute.xlu0 %1031  ;;  %v789_v53 = vld [vmem:[#allocation2 + $0x120] sm:$0xff] }
 0x10d   : > { %v1123_v13 = vsel %vm249_vm0, %v4277_v28, %v904_v44  ;;  %3313 = vmatprep.subr.mxu0 %v2258_v25  ;;  %v2255_v61 = vld [vmem:[%s5154_s1 + $0xc0] sm:$0xff] }
 0x10e   : > { %v1155_v29 = vsel %vm722_vm2, %v1123_v13, %v1032_v10  ;;  %604 = vrot.lane.b32.xlu1 %v4004_v27, %s3545_s30  ;;  %3314 = vmatpush3.msra.mxu0 %v2258_v25  ;;  %v4320_v10 = vld [vmem:[#allocation2 + $0x60] sm:$0xff] }
 0x10f   : > { %2103 = vrot.lane.b32.xlu0 %v4030_v54, %s3545_s30  ;;  %3183 = vmatprep.mubr.msk.f32.mxu0 %vm1195_vm3, %v1155_v29 }
 0x110   : > { %v906_v58 = vpop.permute.xlu1 %905  ;;  %3315 = vmatprep.subr.mxu0 %v2257_v36  ;;  %v1034_v26 = vpop.permute.xlu0 %1033 }
 0x111   : > { %v1124_v45 = vsel %vm249_vm0, %v4293_v17, %v906_v58  ;;  %3316 = vmatpush3.msra.mxu0 %v2257_v36 }
 0x112   : > { %v1156_v27 = vsel %vm722_vm2, %v1124_v45, %v1034_v26  ;;  %1977 = vrot.lane.b32.xlu1 %v3884_v33, %s3544_s27  ;;  %3317 = vmatprep.subr.mxu0 %v2256_v30  ;;  %v790_v33 = vld [vmem:[#allocation2 + $0x128] sm:$0xff] }
 0x113   : > { %606 = vrot.lane.b32.xlu0 %v4014_v43, %s3545_s30  ;;  %3184 = vmatmul.mubr.msk.f32.gmra.mxu0 %vm1195_vm3, %v1156_v27 }
 0x114   : > { %v940_v14 = vpop.permute.xlu1 %939  ;;  %3318 = vmatpush3.msra.mxu0 %v2256_v30  ;;  %v1068_v56 = vpop.permute.xlu0 %1067 }
 0x115   : > { %v1141_v31 = vsel %vm249_vm0, %v789_v53, %v940_v14  ;;  %3319 = vmatprep.subr.mxu0 %v2255_v61  ;;  %v791_v53 = vld [vmem:[#allocation2 + $0x138] sm:$0xff] }
 0x116   : > { %v1173_v35 = vsel %vm722_vm2, %v1141_v31, %v1068_v56  ;;  %2105 = vrot.lane.b32.xlu1 %v4036_v55, %s3545_s30  ;;  %3320 = vmatpush3.msra.mxu0 %v2255_v61  ;;  %v792_v31 = vld [vmem:[#allocation2 + $0x140] sm:$0xff] }
 0x117   : > { %1979 = vrot.lane.b32.xlu0 %v3878_v32, %s3544_s27  ;;  %3210 = vmatprep.mubr.msk.f32.mxu1 %vm1195_vm3, %v1173_v35 }
 0x118   : > { %v942_v43 = vpop.permute.xlu1 %941  ;;  %v1070_v44 = vpop.permute.xlu0 %1069 }
 0x119   : > { %v1142_v25 = vsel %vm249_vm0, %v790_v33, %v942_v43 }
 0x11a   : > { %v1174_v13 = vsel %vm722_vm2, %v1142_v25, %v1070_v44  ;;  %608 = vrot.lane.b32.xlu1 %v4020_v46, %s3545_s30  ;;  %v4330_v46 = vld [vmem:[#allocation2 + $0x68] sm:$0xff] }
 0x11b   : > { %2107 = vrot.lane.b32.xlu0 %v4046_v63, %s3545_s30  ;;  %3211 = vmatmul.mubr.msk.f32.gmra.mxu1 %vm1195_vm3, %v1174_v13 }
 0x11c   : > { %v908_v36 = vpop.permute.xlu1 %907  ;;  %v1036_v29 = vpop.permute.xlu0 %1035 }
 0x11d   : > { %v1125_v32 = vsel %vm249_vm0, %v4320_v10, %v908_v36 }
 0x11e   : > { %v1157_v30 = vsel %vm722_vm2, %v1125_v32, %v1036_v29  ;;  %1981 = vrot.lane.b32.xlu1 %v3910_v40, %s3544_s27 }
 0x11f   : > { %610 = vrot.lane.b32.xlu0 %v4030_v54, %s3545_s30  ;;  %3186 = vmatprep.mubr.msk.f32.mxu0 %vm1195_vm3, %v1157_v30 }
 0x120   : > { %v910_v58 = vpop.permute.xlu1 %909  ;;  %v1038_v26 = vpop.permute.xlu0 %1037 }
 0x121   : > { %v1126_v45 = vsel %vm249_vm0, %v4330_v46, %v910_v58 }
 0x122   : > { %v1158_v27 = vsel %vm722_vm2, %v1126_v45, %v1038_v26  ;;  %2109 = vrot.lane.b32.xlu1 %v4052_v0, %s3545_s30  ;;  %v793_v45 = vld [vmem:[#allocation2 + $0x150] sm:$0xff] }
 0x123   : > { %1983 = vrot.lane.b32.xlu0 %v4062_v41, %s3544_s27  ;;  %3187 = vmatmul.mubr.msk.f32.gmra.mxu0 %vm1195_vm3, %v1158_v27 }
 0x124   : > { %v944_v40 = vpop.permute.xlu1 %943  ;;  %v1072_v61 = vpop.permute.xlu0 %1071 }
 0x125   : > { %v1143_v54 = vsel %vm249_vm0, %v791_v53, %v944_v40 }
 0x126   : > { %v1175_v14 = vsel %vm722_vm2, %v1143_v54, %v1072_v61  ;;  %612 = vrot.lane.b32.xlu1 %v4036_v55, %s3545_s30  ;;  %v4354_v55 = vld [vmem:[#allocation2 + $0x78] sm:$0xff] }
 0x127   : > { %2111 = vrot.lane.b32.xlu0 %v4064_v42, %s3545_s30  ;;  %3213 = vmatprep.mubr.msk.f32.mxu1 %vm1195_vm3, %v1175_v14  ;;  %v794_v54 = vld [vmem:[#allocation2 + $0x158] sm:$0xff] }
 0x128   : > { %v946_v56 = vpop.permute.xlu1 %945  ;;  %v1074_v33 = vpop.permute.xlu0 %1073 }
 0x129   : > { %v1144_v35 = vsel %vm249_vm0, %v792_v31, %v946_v56  ;;  %v4385_v56 = vld [vmem:[#allocation2 + $0x90] sm:$0xff] }
 0x12a   : > { %v1176_v43 = vsel %vm722_vm2, %v1144_v35, %v1074_v33  ;;  %1985 = vrot.lane.b32.xlu1 %v4072_v48, %s3544_s27 }
 0x12b   : > { %614 = vrot.lane.b32.xlu0 %v4046_v63, %s3545_s30  ;;  %3214 = vmatmul.mubr.msk.f32.gmra.mxu1 %vm1195_vm3, %v1176_v43  ;;  %v4364_v63 = vld [vmem:[#allocation2 + $0x80] sm:$0xff] }
 0x12c   : > { %v912_v25 = vpop.permute.xlu1 %911  ;;  %v1040_v13 = vpop.permute.xlu0 %1039 }
 0x12d   : > { %v1127_v44 = vsel %vm249_vm0, %v4354_v55, %v912_v25 }
 0x12e   : > { %v1159_v36 = vsel %vm722_vm2, %v1127_v44, %v1040_v13  ;;  %2113 = vrot.lane.b32.xlu1 %v4074_v49, %s3545_s30  ;;  %v4395_v44 = vld [vmem:[#allocation2 + $0x98] sm:$0xff] }
 0x12f   : > { %1987 = vrot.lane.b32.xlu0 %v4097_v52, %s3544_s27  ;;  %3189 = vmatprep.mubr.msk.f32.mxu0 %vm1195_vm3, %v1159_v36 }
 0x130   : > { %v914_v32 = vpop.permute.xlu1 %913  ;;  %v1042_v30 = vpop.permute.xlu0 %1041 }
 0x131   : > { %v1128_v29 = vsel %vm249_vm0, %v4364_v63, %v914_v32  ;;  %v795_v32 = vld [vmem:[#allocation2 + $0x168] sm:$0xff] }
 0x132   : > { %v1160_v58 = vsel %vm722_vm2, %v1128_v29, %v1042_v30  ;;  %616 = vrot.lane.b32.xlu1 %v4052_v0, %s3545_s30 }
 0x133   : > { %2115 = vrot.lane.b32.xlu0 %v4101_v39, %s3545_s30  ;;  %3190 = vmatmul.mubr.msk.f32.gmra.mxu0 %vm1195_vm3, %v1160_v58 }
 0x134   : > { %v948_v26 = vpop.permute.xlu1 %947  ;;  %v1076_v53 = vpop.permute.xlu0 %1075 }
 0x135   : > { %v1145_v27 = vsel %vm249_vm0, %v793_v45, %v948_v26  ;;  %v796_v45 = vld [vmem:[#allocation2 + $0x170] sm:$0xff] }
 0x136   : > { %v1177_v40 = vsel %vm722_vm2, %v1145_v27, %v1076_v53  ;;  %1989 = vrot.lane.b32.xlu1 %v4115_v5, %s3544_s27 }
 0x137   : > { %2117 = vrot.lane.b32.xlu0 %v4119_v23, %s3545_s30  ;;  %3216 = vmatprep.mubr.msk.f32.mxu1 %vm1195_vm3, %v1177_v40  ;;  %v4419_v40 = vld [vmem:[#allocation2 + $0xa8] sm:$0xff] }
 0x138   : > { %v950_v0 = vpop.permute.xlu1 %949  ;;  %v1078_v14 = vpop.permute.xlu0 %1077 }
 0x139   : > { %v1146_v61 = vsel %vm249_vm0, %v794_v54, %v950_v0  ;;  %v4424_v0 = vld [vmem:[#allocation2 + $0xd9] sm:$0xff] }
 0x13a   : > { %v1178_v31 = vsel %vm722_vm2, %v1146_v61, %v1078_v14  ;;  %490 = vrot.lane.b32.xlu1 %v4062_v41, %s3544_s27 }
 0x13b   : > { %618 = vrot.lane.b32.xlu0 %v4064_v42, %s3545_s30  ;;  %3217 = vmatmul.mubr.msk.f32.gmra.mxu1 %vm1195_vm3, %v1178_v31 }
 0x13c   : > { %v916_v35 = vpop.permute.xlu1 %915  ;;  %v1044_v43 = vpop.permute.xlu0 %1043 }
 0x13d   : > { %v1129_v33 = vsel %vm249_vm0, %v4385_v56, %v916_v35  ;;  %v1917_v35 = vld [vmem:[#allocation2 + $0xda] sm:$0xff] }
 0x13e   : > { %v1161_v25 = vsel %vm722_vm2, %v1129_v33, %v1044_v43  ;;  %492 = vrot.lane.b32.xlu1 %v4072_v48, %s3544_s27 }
 0x13f   : > { %1991 = vrot.lane.b32.xlu0 %v4138_v21, %s3544_s27  ;;  %3192 = vmatprep.mubr.msk.f32.mxu0 %vm1195_vm3, %v1161_v25 }
 0x140   : > { %v918_v41 = vpop.permute.xlu1 %917  ;;  %v1046_v13 = vpop.permute.xlu0 %1045 }
 0x141   : > { %v1130_v42 = vsel %vm249_vm0, %v4395_v44, %v918_v41  ;;  %v797_v41 = vld [vmem:[#allocation2 + $0x180] sm:$0xff] }
 0x142   : > { %v1162_v36 = vsel %vm722_vm2, %v1130_v42, %v1046_v13  ;;  %620 = vrot.lane.b32.xlu1 %v4074_v49, %s3545_s30  ;;  %v4443_v13 = vld [vmem:[#allocation2 + $0xe2] sm:$0xff] }
 0x143   : > { %2119 = vrot.lane.b32.xlu0 %v4140_v19, %s3545_s30  ;;  %3193 = vmatmul.mubr.msk.f32.gmra.mxu0 %vm1195_vm3, %v1162_v36 }
 0x144   : > { %v952_v48 = vpop.permute.xlu1 %951  ;;  %v1080_v30 = vpop.permute.xlu0 %1079 }
 0x145   : > { %v1147_v29 = vsel %vm249_vm0, %v795_v32, %v952_v48 }
 0x146   : > { %v1179_v58 = vsel %vm722_vm2, %v1147_v29, %v1080_v30  ;;  %1993 = vrot.lane.b32.xlu1 %v4152_v12, %s3544_s27  ;;  %v798_v29 = vld [vmem:[#allocation2 + $0x188] sm:$0xff] }
 0x147   : > { %2121 = vrot.lane.b32.xlu0 %v4166_v4, %s3545_s30  ;;  %3219 = vmatprep.mubr.msk.f32.mxu1 %vm1195_vm3, %v1179_v58 }
 0x148   : > { %v954_v49 = vpop.permute.xlu1 %953  ;;  %v1082_v27 = vpop.permute.xlu0 %1081 }
 0x149   : > { %v1148_v26 = vsel %vm249_vm0, %v796_v45, %v954_v49  ;;  %v4455_v49 = vld [vmem:[#allocation2 + $0xc0] sm:$0xff] }
 0x14a   : > { %v1180_v53 = vsel %vm722_vm2, %v1148_v26, %v1082_v27  ;;  %494 = vrot.lane.b32.xlu1 %v4097_v52, %s3544_s27  ;;  %v4431_v52 = vld [vmem:[#allocation2 + $0xb0] sm:$0xff] }
 0x14b   : > { %622 = vrot.lane.b32.xlu0 %v4101_v39, %s3545_s30  ;;  %3220 = vmatmul.mubr.msk.f32.gmra.mxu1 %vm1195_vm3, %v1180_v53  ;;  %v4460_v27 = vld [vmem:[#allocation2 + $0xf1] sm:$0xff] }
 0x14c   : > { %v920_v54 = vpop.permute.xlu1 %919  ;;  %v1048_v14 = vpop.permute.xlu0 %1047 }
 0x14d   : > { %v1131_v61 = vsel %vm249_vm0, %v4419_v40, %v920_v54 }
 0x14e   : > { %v1163_v31 = vsel %vm722_vm2, %v1131_v61, %v1048_v14  ;;  %496 = vrot.lane.b32.xlu1 %v4115_v5, %s3544_s27  ;;  %v1886_v5 = vld [vmem:[#allocation2 + $0xe1] sm:$0xff] }
 0x14f   : > { %1995 = vrot.lane.b32.xlu0 %v4424_v0, %s3544_s27  ;;  %3195 = vmatprep.mubr.msk.f32.mxu0 %vm1195_vm3, %v1163_v31  ;;  %v338_v61 = vld [vmem:[#allocation2] sm:$0xff] }
 0x150   : > { %v922_v39 = vpop.permute.xlu1 %921  ;;  %v1050_v43 = vpop.permute.xlu0 %1049  ;;  %v690_v31 = vsel %vm249_vm0, %v338_v61, %v4066_v47  ;;  %v4486_v47 = vld [vmem:[#allocation2 + $0xfa] sm:$0xff]  ;;  %v1841_v61 = vld [vmem:[#allocation2 + $0x48] sm:$0xff] }
 0x151   : > { %v1132_v33 = vsel %vm249_vm0, %v4431_v52, %v922_v39  ;;  %v4474_v39 = vld [vmem:[#allocation2 + $0xc8] sm:$0xff] }
 0x152   : > { %v1164_v25 = vsel %vm722_vm2, %v1132_v33, %v1050_v43  ;;  %624 = vrot.lane.b32.xlu1 %v4119_v23, %s3545_s30 }
 0x153   : > { %2123 = vrot.lane.b32.xlu0 %v1917_v35, %s3545_s30  ;;  %3196 = vmatmul.mubr.msk.f32.gmra.mxu0 %vm1195_vm3, %v1164_v25 }
 0x154   : > { %v956_v42 = vpop.permute.xlu1 %955  ;;  %v1084_v32 = vpop.permute.xlu0 %1083 }
 0x155   : > { %v1149_v36 = vsel %vm249_vm0, %v797_v41, %v956_v42  ;;  %v339_v42 = vld [vmem:[#allocation2 + $0x8] sm:$0xff] }
 0x156   : > { %v1181_v48 = vsel %vm722_vm2, %v1149_v36, %v1084_v32  ;;  %1997 = vrot.lane.b32.xlu1 %v1886_v5, %s3544_s27 }
 0x157   : > { %2125 = vrot.lane.b32.xlu0 %v4443_v13, %s3545_s30  ;;  %3222 = vmatprep.mubr.msk.f32.mxu1 %vm1195_vm3, %v1181_v48  ;;  %v691_v48 = vsel %vm249_vm0, %v339_v42, %v4076_v50  ;;  %v692_v50 = vsel %vm249_vm0, %v4154_v15, %v4082_v60 }
 0x158   : > { %v958_v23 = vpop.permute.xlu1 %957  ;;  %v1086_v58 = vpop.permute.xlu0 %1085 }
 0x159   : > { %v1150_v30 = vsel %vm249_vm0, %v798_v29, %v958_v23 }
 0x15a   : > { %v1182_v45 = vsel %vm722_vm2, %v1150_v30, %v1086_v58  ;;  %498 = vrot.lane.b32.xlu1 %v4138_v21, %s3544_s27 }
 0x15b   : > { %626 = vrot.lane.b32.xlu0 %v4140_v19, %s3545_s30  ;;  %3223 = vmatmul.mubr.msk.f32.gmra.mxu1 %vm1195_vm3, %v1182_v45  ;;  %v4470_v19 = vld [vmem:[#allocation2 + $0xf2] sm:$0xff] }
 0x15c   : > { %v924_v26 = vpop.permute.xlu1 %923  ;;  %v1052_v54 = vpop.permute.xlu0 %1051 }
 0x15d   : > { %v1133_v53 = vsel %vm249_vm0, %v4455_v49, %v924_v26  ;;  %v4505_v26 = vld [vmem:[#allocation2 + $0x109] sm:$0xff] }
 0x15e   : > { %v1165_v14 = vsel %vm722_vm2, %v1133_v53, %v1052_v54  ;;  %500 = vrot.lane.b32.xlu1 %v4152_v12, %s3544_s27  ;;  %v4482_v12 = vld [vmem:[#allocation2 + $0xf9] sm:$0xff] }
 0x15f   : > { %1999 = vrot.lane.b32.xlu0 %v4460_v27, %s3544_s27  ;;  %3198 = vmatprep.mubr.msk.f32.mxu0 %vm1195_vm3, %v1165_v14  ;;  %v4517_v14 = vld [vmem:[#allocation2 + $0x10a] sm:$0xff] }
 0x160   : > { %v926_v21 = vpop.permute.xlu1 %925 }
 0x161   : > { %v595_v33 = vpop.permute.xlu0 %594  ;;  %v1134_v25 = vsel %vm249_vm0, %v4474_v39, %v926_v21 }
 0x162   : > { %v723_v43 = vsel %vm722_vm2, %v690_v31, %v595_v33  ;;  %628 = vrot.lane.b32.xlu1 %v4166_v4, %s3545_s30  ;;  %v693_v31 = vsel %vm249_vm0, %v4171_v18, %v4091_v34  ;;  %v694_v34 = vsel %vm249_vm0, %v4216_v57, %v4084_v62  ;;  %v1842_v18 = vld [vmem:[#allocation2 + $0x50] sm:$0xff] }
 0x163   : > { %2127 = vrot.lane.b32.xlu0 %v4470_v19, %s3545_s30  ;;  %3249 = vmatprep.mubr.msk.f32.mxu1 %vm1195_vm3, %v723_v43  ;;  %v4531_v43 = vld [vmem:[#allocation2 + $0x112] sm:$0xff] }
 0x164   : > { %v1054_v41 = vpop.permute.xlu1 %1053 }
 0x165   : > { %v1166_v36 = vsel %vm722_vm2, %v1134_v25, %v1054_v41  ;;  %v1968_v32 = vpop.permute.xlu0 %1967 }
 0x166   : > { %2001 = vrot.lane.b32.xlu1 %v4482_v12, %s3544_s27  ;;  %3199 = vmatmul.mubr.msk.f32.gmra.mxu0 %vm1195_vm3, %v1166_v36  ;;  %v2191_v4 = vsel %vm249_vm0, %v4216_v57, %v1968_v32 }
 0x167   : > { %2129 = vrot.lane.b32.xlu0 %v4486_v47, %s3545_s30 }
 0x168   : > { %v597_v29 = vpop.permute.xlu1 %596 }
 0x169   : > { %v724_v23 = vsel %vm722_vm2, %v691_v48, %v597_v29  ;;  %v2096_v30 = vpop.permute.xlu0 %2095  ;;  %v1843_v29 = vld [vmem:[#allocation2 + $0x60] sm:$0xff] }
 0x16a   : > { %v2223_v58 = vsel %vm722_vm2, %v2191_v4, %v2096_v30  ;;  %502 = vrot.lane.b32.xlu1 %v4424_v0, %s3544_s27  ;;  %3250 = vmatmul.mubr.msk.f32.vlgmr.msra.gmra.mxu1 %vm1195_vm3, %v724_v23  ;;  %v4551_v23 = vld [vmem:[#allocation2 + $0x121] sm:$0xff] }
 0x16b   : > { %630 = vrot.lane.b32.xlu0 %v1917_v35, %s3545_s30  ;;  %3321 = vmatprep.mubr.msk.f32.mxu0 %vm1195_vm3, %v2223_v58  ;;  %v4563_v58 = vld [vmem:[#allocation2 + $0x122] sm:$0xff] }
 0x16c   : > { %v1970_v45 = vpop.permute.xlu1 %1969 }
 0x16d   : > { %v599_v53 = vpop.permute.xlu0 %598  ;;  %v2192_v0 = vsel %vm249_vm0, %v4232_v20, %v1970_v45 }
 0x16e   : > { %v725_v54 = vsel %vm722_vm2, %v692_v50, %v599_v53  ;;  %504 = vrot.lane.b32.xlu1 %v1886_v5, %s3544_s27  ;;  %v4526_v5 = vld [vmem:[#allocation2 + $0x111] sm:$0xff] }
 0x16f   : > { %2003 = vrot.lane.b32.xlu0 %v4505_v26, %s3544_s27  ;;  %3252 = vmatprep.mubr.msk.f32.mxu1 %vm1195_vm3, %v725_v54  ;;  %v696_v54 = vsel %vm249_vm0, %v4277_v28, %v4093_v51  ;;  %v697_v28 = vsel %vm249_vm0, %v4293_v17, %v4117_v38  ;;  %v1925_v38 = vld [vmem:[#allocation2 + $0x13a] sm:$0xff]  ;;  %v698_v17 = vsel %vm249_vm0, %v4320_v10, %v4103_v59 }
 0x170   : > { %v2098_v35 = vpop.permute.xlu1 %2097  ;;  %v699_v10 = vsel %vm249_vm0, %v4330_v46, %v4127_v22  ;;  %v700_v22 = vsel %vm249_vm0, %v4354_v55, %v4121_v24  ;;  %v1896_v55 = vld [vmem:[#allocation2 + $0x159] sm:$0xff] }
 0x171   : > { %v2224_v21 = vsel %vm722_vm2, %v2192_v0, %v2098_v35  ;;  %v1972_v60 = vpop.permute.xlu0 %1971  ;;  %v1844_v0 = vld [vmem:[#allocation2 + $0x68] sm:$0xff] }
 0x172   : > { %632 = vrot.lane.b32.xlu1 %v4443_v13, %s3545_s30  ;;  %3322 = vmatmul.mubr.msk.f32.vlgmr.msra.gmra.mxu0 %vm1195_vm3, %v2224_v21  ;;  %v2193_v15 = vsel %vm249_vm0, %v1841_v61, %v1972_v60  ;;  %v1845_v60 = vld [vmem:[#allocation2 + $0x78] sm:$0xff] }
 0x173   : > { %2131 = vrot.lane.b32.xlu0 %v4517_v14, %s3545_s30 }
 0x174   : > { %v601_v33 = vpop.permute.xlu1 %600 }
 0x175   : > { %v726_v25 = vsel %vm722_vm2, %v693_v31, %v601_v33  ;;  %v2100_v41 = vpop.permute.xlu0 %2099 }
 0x176   : > { %v2225_v13 = vsel %vm722_vm2, %v2193_v15, %v2100_v41  ;;  %2005 = vrot.lane.b32.xlu1 %v4526_v5, %s3544_s27  ;;  %3253 = vmatmul.mubr.msk.f32.gmra.mxu1 %vm1195_vm3, %v726_v25  ;;  %v4597_v25 = vld [vmem:[#allocation2 + $0x139] sm:$0xff] }
 0x177   : > { %2133 = vrot.lane.b32.xlu0 %v4531_v43, %s3545_s30  ;;  %3324 = vmatprep.mubr.msk.f32.mxu0 %vm1195_vm3, %v2225_v13 }
 0x178   : > { %v1974_v42 = vpop.permute.xlu1 %1973 }
 0x179   : > { %v603_v36 = vpop.permute.xlu0 %602  ;;  %v2194_v4 = vsel %vm249_vm0, %v1842_v18, %v1974_v42 }
 0x17a   : > { %v727_v32 = vsel %vm722_vm2, %v694_v34, %v603_v36  ;;  %506 = vrot.lane.b32.xlu1 %v4460_v27, %s3544_s27 }
 0x17b   : > { %634 = vrot.lane.b32.xlu0 %v4470_v19, %s3545_s30  ;;  %3255 = vmatprep.mubr.msk.f32.mxu1 %vm1195_vm3, %v727_v32  ;;  %v695_v19 = vsel %vm249_vm0, %v4232_v20, %v4099_v37  ;;  %v4575_v20 = vld [vmem:[#allocation2 + $0x12a] sm:$0xff] }
 0x17c   : > { %v2102_v48 = vpop.permute.xlu1 %2101 }
 0x17d   : > { %v2226_v62 = vsel %vm722_vm2, %v2194_v4, %v2102_v48  ;;  %v1976_v57 = vpop.permute.xlu0 %1975  ;;  %v1926_v4 = vld [vmem:[#allocation2 + $0x142] sm:$0xff] }
 0x17e   : > { %508 = vrot.lane.b32.xlu1 %v4482_v12, %s3544_s27  ;;  %3325 = vmatmul.mubr.msk.f32.gmra.mxu0 %vm1195_vm3, %v2226_v62  ;;  %v2195_v27 = vsel %vm249_vm0, %v1843_v29, %v1976_v57  ;;  %v4572_v12 = vld [vmem:[#allocation2 + $0x129] sm:$0xff] }
 0x17f   : > { %2007 = vrot.lane.b32.xlu0 %v4551_v23, %s3544_s27 }
 0x180   : > { %v605_v30 = vpop.permute.xlu1 %604 }
 0x181   : > { %v728_v45 = vsel %vm722_vm2, %v695_v19, %v605_v30  ;;  %v2104_v50 = vpop.permute.xlu0 %2103  ;;  %v4633_v30 = vld [vmem:[#allocation2 + $0x151] sm:$0xff] }
 0x182   : > { %v2227_v53 = vsel %vm722_vm2, %v2195_v27, %v2104_v50  ;;  %636 = vrot.lane.b32.xlu1 %v4486_v47, %s3545_s30  ;;  %3256 = vmatmul.mubr.msk.f32.gmra.mxu1 %vm1195_vm3, %v728_v45  ;;  %v1927_v50 = vld [vmem:[#allocation2 + $0x152] sm:$0xff] }
 0x183   : > { %2135 = vrot.lane.b32.xlu0 %v4563_v58, %s3545_s30  ;;  %3327 = vmatprep.mubr.msk.f32.mxu0 %vm1195_vm3, %v2227_v53 }
 0x184   : > { %v1978_v37 = vpop.permute.xlu1 %1977 }
 0x185   : > { %v607_v35 = vpop.permute.xlu0 %606  ;;  %v2196_v61 = vsel %vm249_vm0, %v1844_v0, %v1978_v37  ;;  %v1928_v0 = vld [vmem:[#allocation2 + $0x15a] sm:$0xff] }
 0x186   : > { %v729_v47 = vsel %vm722_vm2, %v696_v54, %v607_v35  ;;  %2009 = vrot.lane.b32.xlu1 %v4572_v12, %s3544_s27 }
 0x187   : > { %2137 = vrot.lane.b32.xlu0 %v4575_v20, %s3545_s30  ;;  %3258 = vmatprep.mubr.msk.f32.mxu1 %vm1195_vm3, %v729_v47 }
 0x188   : > { %v2106_v21 = vpop.permute.xlu1 %2105 }
 0x189   : > { %v2228_v15 = vsel %vm722_vm2, %v2196_v61, %v2106_v21  ;;  %v1980_v31 = vpop.permute.xlu0 %1979 }
 0x18a   : > { %510 = vrot.lane.b32.xlu1 %v4505_v26, %s3544_s27  ;;  %3328 = vmatmul.mubr.msk.f32.gmra.mxu0 %vm1195_vm3, %v2228_v15  ;;  %v2197_v51 = vsel %vm249_vm0, %v1845_v60, %v1980_v31  ;;  %v4669_v15 = vld [vmem:[#allocation2 + $0x169] sm:$0xff] }
 0x18b   : > { %638 = vrot.lane.b32.xlu0 %v4517_v14, %s3545_s30  ;;  %v1846_v14 = vld [vmem:[#allocation2 + $0x80] sm:$0xff] }
 0x18c   : > { %v609_v33 = vpop.permute.xlu1 %608 }
 0x18d   : > { %v730_v41 = vsel %vm722_vm2, %v697_v28, %v609_v33  ;;  %v2108_v13 = vpop.permute.xlu0 %2107 }
 0x18e   : > { %v2229_v42 = vsel %vm722_vm2, %v2197_v51, %v2108_v13  ;;  %512 = vrot.lane.b32.xlu1 %v4526_v5, %s3544_s27  ;;  %3259 = vmatmul.mubr.msk.f32.gmra.mxu1 %vm1195_vm3, %v730_v41  ;;  %v1894_v5 = vld [vmem:[#allocation2 + $0x141] sm:$0xff] }
 0x18f   : > { %2011 = vrot.lane.b32.xlu0 %v4597_v25, %s3544_s27  ;;  %3330 = vmatprep.mubr.msk.f32.mxu0 %vm1195_vm3, %v2229_v42 }
 0x190   : > { %v1982_v26 = vpop.permute.xlu1 %1981 }
 0x191   : > { %v611_v34 = vpop.permute.xlu0 %610  ;;  %v2198_v36 = vsel %vm249_vm0, %v1846_v14, %v1982_v26 }
 0x192   : > { %v731_v18 = vsel %vm722_vm2, %v698_v17, %v611_v34  ;;  %640 = vrot.lane.b32.xlu1 %v4531_v43, %s3545_s30 }
 0x193   : > { %2139 = vrot.lane.b32.xlu0 %v1925_v38, %s3545_s30  ;;  %3261 = vmatprep.mubr.msk.f32.mxu1 %vm1195_vm3, %v731_v18 }
 0x194   : > { %v2110_v32 = vpop.permute.xlu1 %2109 }
 0x195   : > { %v2230_v48 = vsel %vm722_vm2, %v2198_v36, %v2110_v32  ;;  %v1984_v29 = vpop.permute.xlu0 %1983 }
 0x196   : > { %2013 = vrot.lane.b32.xlu1 %v1894_v5, %s3544_s27  ;;  %3331 = vmatmul.mubr.msk.f32.gmra.mxu0 %vm1195_vm3, %v2230_v48  ;;  %v2199_v59 = vsel %vm249_vm0, %v4385_v56, %v1984_v29 }
 0x197   : > { %2141 = vrot.lane.b32.xlu0 %v1926_v4, %s3545_s30 }
 0x198   : > { %v613_v43 = vpop.permute.xlu1 %612 }
 0x199   : > { %v732_v62 = vsel %vm722_vm2, %v699_v10, %v613_v43  ;;  %v2112_v57 = vpop.permute.xlu0 %2111  ;;  %v1853_v43 = vld [vmem:[#allocation2 + $0xd8] sm:$0xff] }
 0x19a   : > { %v2231_v27 = vsel %vm722_vm2, %v2199_v59, %v2112_v57  ;;  %514 = vrot.lane.b32.xlu1 %v4551_v23, %s3544_s27  ;;  %3262 = vmatmul.mubr.msk.f32.gmra.mxu1 %vm1195_vm3, %v732_v62  ;;  %v1931_v62 = vld [vmem:[#allocation2 + $0x182] sm:$0xff] }
 0x19b   : > { %642 = vrot.lane.b32.xlu0 %v4563_v58, %s3545_s30  ;;  %3333 = vmatprep.mubr.msk.f32.mxu0 %vm1195_vm3, %v2231_v27 }
 0x19c   : > { %v1986_v19 = vpop.permute.xlu1 %1985 }
 0x19d   : > { %v615_v46 = vpop.permute.xlu0 %614  ;;  %v2200_v23 = vsel %vm249_vm0, %v4395_v44, %v1986_v19 }
 0x19e   : > { %v733_v45 = vsel %vm722_vm2, %v700_v22, %v615_v46  ;;  %516 = vrot.lane.b32.xlu1 %v4572_v12, %s3544_s27  ;;  %v701_v12 = vsel %vm249_vm0, %v4364_v63, %v4132_v16  ;;  %v1932_v22 = vld [vmem:[#allocation2 + $0x18a] sm:$0xff] }
 0x19f   : > { %2015 = vrot.lane.b32.xlu0 %v4633_v30, %s3544_s27  ;;  %3264 = vmatprep.mubr.msk.f32.mxu1 %vm1195_vm3, %v733_v45 }
 0x1a0   : > { %v2114_v58 = vpop.permute.xlu1 %2113 }
 0x1a1   : > { %v2232_v53 = vsel %vm722_vm2, %v2200_v23, %v2114_v58  ;;  %v1988_v37 = vpop.permute.xlu0 %1987  ;;  %v1854_v58 = vld [vmem:[#allocation2 + $0xe0] sm:$0xff] }
 0x1a2   : > { %644 = vrot.lane.b32.xlu1 %v4575_v20, %s3545_s30  ;;  %3334 = vmatmul.mubr.msk.f32.gmra.mxu0 %vm1195_vm3, %v2232_v53  ;;  %v2201_v24 = vsel %vm249_vm0, %v4419_v40, %v1988_v37 }
 0x1a3   : > { %2143 = vrot.lane.b32.xlu0 %v1927_v50, %s3545_s30 }
 0x1a4   : > { %v617_v54 = vpop.permute.xlu1 %616 }
 0x1a5   : > { %v734_v35 = vsel %vm722_vm2, %v701_v12, %v617_v54  ;;  %v2116_v47 = vpop.permute.xlu0 %2115 }
 0x1a6   : > { %v2233_v61 = vsel %vm722_vm2, %v2201_v24, %v2116_v47  ;;  %2017 = vrot.lane.b32.xlu1 %v1896_v55, %s3544_s27  ;;  %3265 = vmatmul.mubr.msk.f32.gmra.mxu1 %vm1195_vm3, %v734_v35  ;;  %v1855_v47 = vld [vmem:[#allocation2 + $0xf0] sm:$0xff] }
 0x1a7   : > { %2145 = vrot.lane.b32.xlu0 %v1928_v0, %s3545_s30  ;;  %3336 = vmatprep.mubr.msk.f32.mxu0 %vm1195_vm3, %v2233_v61  ;;  %v1933_v61 = vld [vmem:[#allocation2 + $0x19a] sm:$0xff] }
 0x1a8   : > { %v1990_v20 = vpop.permute.xlu1 %1989 }
 0x1a9   : > { %v2202_v21 = vsel %vm249_vm0, %v4431_v52, %v1990_v20  ;;  %v2118_v16 = vpop.permute.xlu0 %2117 }
 0x1aa   : > { %v2234_v63 = vsel %vm722_vm2, %v2202_v21, %v2118_v16  ;;  %518 = vrot.lane.b32.xlu1 %v4597_v25, %s3544_s27  ;;  %v1929_v25 = vld [vmem:[#allocation2 + $0x16a] sm:$0xff] }
 0x1ab   : > { %646 = vrot.lane.b32.xlu0 %v1925_v38, %s3545_s30  ;;  %3337 = vmatmul.mubr.msk.f32.gmra.mxu0 %vm1195_vm3, %v2234_v63  ;;  %v1930_v38 = vld [vmem:[#allocation2 + $0x172] sm:$0xff] }
 0x1ac   : > { %v491_v60 = vpop.permute.xlu1 %490 }
 0x1ad   : > { %v702_v31 = vsel %vm249_vm0, %v4385_v56, %v491_v60  ;;  %v619_v51 = vpop.permute.xlu0 %618  ;;  %v1898_v56 = vld [vmem:[#allocation2 + $0x171] sm:$0xff] }
 0x1ae   : > { %v735_v28 = vsel %vm722_vm2, %v702_v31, %v619_v51  ;;  %520 = vrot.lane.b32.xlu1 %v1894_v5, %s3544_s27  ;;  %v1856_v51 = vld [vmem:[#allocation2 + $0xf8] sm:$0xff] }
 0x1af   : > { %2019 = vrot.lane.b32.xlu0 %v4669_v15, %s3544_s27  ;;  %3267 = vmatprep.mubr.msk.f32.mxu1 %vm1195_vm3, %v735_v28  ;;  %v1934_v28 = vld [vmem:[#allocation2 + $0x1a2] sm:$0xff] }
 0x1b0   : > { %v493_v33 = vpop.permute.xlu1 %492 }
 0x1b1   : > { %v1992_v41 = vpop.permute.xlu0 %1991  ;;  %v703_v42 = vsel %vm249_vm0, %v4395_v44, %v493_v33 }
 0x1b2   : > { %648 = vrot.lane.b32.xlu1 %v1926_v4, %s3545_s30  ;;  %v2203_v13 = vsel %vm249_vm0, %v4455_v49, %v1992_v41  ;;  %v1899_v4 = vld [vmem:[#allocation2 + $0x181] sm:$0xff] }
 0x1b3   : > { %2147 = vrot.lane.b32.xlu0 %v1929_v25, %s3545_s30 }
 0x1b4   : > { %v621_v26 = vpop.permute.xlu1 %620 }
 0x1b5   : > { %v736_v17 = vsel %vm722_vm2, %v703_v42, %v621_v26  ;;  %v2120_v14 = vpop.permute.xlu0 %2119 }
 0x1b6   : > { %v2235_v34 = vsel %vm722_vm2, %v2203_v13, %v2120_v14  ;;  %2021 = vrot.lane.b32.xlu1 %v1898_v56, %s3544_s27  ;;  %3268 = vmatmul.mubr.msk.f32.gmra.mxu1 %vm1195_vm3, %v736_v17  ;;  %v1857_v17 = vld [vmem:[#allocation2 + $0x108] sm:$0xff] }
 0x1b7   : > { %2149 = vrot.lane.b32.xlu0 %v1930_v38, %s3545_s30  ;;  %3339 = vmatprep.mubr.msk.f32.mxu0 %vm1195_vm3, %v2235_v34 }
 0x1b8   : > { %v1994_v18 = vpop.permute.xlu1 %1993 }
 0x1b9   : > { %v2204_v5 = vsel %vm249_vm0, %v4474_v39, %v1994_v18  ;;  %v2122_v44 = vpop.permute.xlu0 %2121 }
 0x1ba   : > { %v2236_v36 = vsel %vm722_vm2, %v2204_v5, %v2122_v44  ;;  %522 = vrot.lane.b32.xlu1 %v4633_v30, %s3544_s27 }
 0x1bb   : > { %650 = vrot.lane.b32.xlu0 %v1927_v50, %s3545_s30  ;;  %3340 = vmatmul.mubr.msk.f32.gmra.mxu0 %vm1195_vm3, %v2236_v36 }
 0x1bc   : > { %v495_v32 = vpop.permute.xlu1 %494 }
 0x1bd   : > { %v704_v48 = vsel %vm249_vm0, %v4419_v40, %v495_v32  ;;  %v623_v29 = vpop.permute.xlu0 %622  ;;  %v1900_v40 = vld [vmem:[#allocation2 + $0x189] sm:$0xff] }
 0x1be   : > { %v737_v59 = vsel %vm722_vm2, %v704_v48, %v623_v29  ;;  %524 = vrot.lane.b32.xlu1 %v1896_v55, %s3544_s27  ;;  %v1901_v55 = vld [vmem:[#allocation2 + $0x199] sm:$0xff] }
 0x1bf   : > { %2023 = vrot.lane.b32.xlu0 %v1899_v4, %s3544_s27  ;;  %3270 = vmatprep.mubr.msk.f32.mxu1 %vm1195_vm3, %v737_v59  ;;  %v1858_v4 = vld [vmem:[#allocation2 + $0x110] sm:$0xff] }
 0x1c0   : > { %v497_v10 = vpop.permute.xlu1 %496 }
 0x1c1   : > { %v1996_v57 = vpop.permute.xlu0 %1995  ;;  %v705_v19 = vsel %vm249_vm0, %v4431_v52, %v497_v10 }
 0x1c2   : > { %652 = vrot.lane.b32.xlu1 %v1928_v0, %s3545_s30  ;;  %v2205_v27 = vsel %vm249_vm0, %v1853_v43, %v1996_v57 }
 0x1c3   : > { %2151 = vrot.lane.b32.xlu0 %v1931_v62, %s3545_s30 }
 0x1c4   : > { %v625_v30 = vpop.permute.xlu1 %624 }
 0x1c5   : > { %v738_v46 = vsel %vm722_vm2, %v705_v19, %v625_v30  ;;  %v2124_v45 = vpop.permute.xlu0 %2123  ;;  %v1859_v19 = vld [vmem:[#allocation2 + $0x120] sm:$0xff] }
 0x1c6   : > { %v2237_v23 = vsel %vm722_vm2, %v2205_v27, %v2124_v45  ;;  %2025 = vrot.lane.b32.xlu1 %v1900_v40, %s3544_s27  ;;  %3271 = vmatmul.mubr.msk.f32.gmra.mxu1 %vm1195_vm3, %v738_v46 }
 0x1c7   : > { %2153 = vrot.lane.b32.xlu0 %v1932_v22, %s3545_s30  ;;  %3342 = vmatprep.mubr.msk.f32.mxu0 %vm1195_vm3, %v2237_v23 }
 0x1c8   : > { %v1998_v50 = vpop.permute.xlu1 %1997 }
 0x1c9   : > { %v2206_v53 = vsel %vm249_vm0, %v1854_v58, %v1998_v50  ;;  %v2126_v52 = vpop.permute.xlu0 %2125 }
 0x1ca   : > { %v2238_v37 = vsel %vm722_vm2, %v2206_v53, %v2126_v52  ;;  %526 = vrot.lane.b32.xlu1 %v4669_v15, %s3544_s27  ;;  %v1860_v53 = vld [vmem:[#allocation2 + $0x128] sm:$0xff] }
 0x1cb   : > { %654 = vrot.lane.b32.xlu0 %v1929_v25, %s3545_s30  ;;  %3343 = vmatmul.mubr.msk.f32.gmra.mxu0 %vm1195_vm3, %v2238_v37 }
 0x1cc   : > { %v499_v24 = vpop.permute.xlu1 %498 }
 0x1cd   : > { %v706_v12 = vsel %vm249_vm0, %v4455_v49, %v499_v24  ;;  %v627_v54 = vpop.permute.xlu0 %626  ;;  %v1902_v49 = vld [vmem:[#allocation2 + $0x1a1] sm:$0xff] }
 0x1ce   : > { %v739_v0 = vsel %vm722_vm2, %v706_v12, %v627_v54  ;;  %528 = vrot.lane.b32.xlu1 %v1898_v56, %s3544_s27  ;;  %v4764_v12 = vpop.f32.mrf.mxu1 }
 0x1cf   : > { %3273 = vmatprep.mubr.msk.f32.mxu1 %vm1195_vm3, %v739_v0  ;;  %2027 = vrot.lane.b32.xlu0 %v1901_v55, %s3544_s27 }
 0x1d0   : > { %v501_v35 = vpop.permute.xlu1 %500 }
 0x1d1   : > { %v2000_v20 = vpop.permute.xlu0 %1999  ;;  %v707_v16 = vsel %vm249_vm0, %v4474_v39, %v501_v35 }
 0x1d2   : > { %656 = vrot.lane.b32.xlu1 %v1930_v38, %s3545_s30  ;;  %v2207_v21 = vsel %vm249_vm0, %v1855_v47, %v2000_v20 }
 0x1d3   : > { %2155 = vrot.lane.b32.xlu0 %v1933_v61, %s3545_s30  ;;  %v4769_v61 = vpop.f32.mrf.mxu1 }
 0x1d4   : > { %v629_v63 = vpop.permute.xlu1 %628 }
 0x1d5   : > { %v740_v60 = vsel %vm722_vm2, %v707_v16, %v629_v63  ;;  %v2128_v15 = vpop.permute.xlu0 %2127  ;;  %v4773_v63 = vpop.f32.mrf.mxu1 }
 0x1d6   : > { %v2239_v31 = vsel %vm722_vm2, %v2207_v21, %v2128_v15  ;;  %2029 = vrot.lane.b32.xlu1 %v1902_v49, %s3544_s27  ;;  %3274 = vmatmul.mubr.msk.f32.gmra.mxu1 %vm1195_vm3, %v740_v60  ;;  %v1861_v21 = vld [vmem:[#allocation2 + $0x138] sm:$0xff]  ;;  %v4771_v49 = vpop.f32.mrf.mxu0  ;;  %s2659_s27 = sld [smem:[#allocation3]] }
 0x1d7   : > { %3345 = vmatprep.mubr.msk.f32.mxu0 %vm1195_vm3, %v2239_v31 }
 0x1d8   : > { %v2002_v33 = vpop.permute.xlu1 %2001 }
 0x1d9   : > { %v2208_v25 = vsel %vm249_vm0, %v1856_v51, %v2002_v33  ;;  %v2130_v41 = vpop.permute.xlu0 %2129 }
 0x1da   : > { %v2240_v39 = vsel %vm722_vm2, %v2208_v25, %v2130_v41  ;;  %2157 = vrot.lane.b32.xlu1 %v1934_v28, %s3545_s30  ;;  %v4780_v25 = vpop.f32.mrf.mxu1 }
 0x1db   : > { %3346 = vmatmul.mubr.msk.f32.gmra.mxu0 %vm1195_vm3, %v2240_v39  ;;  %v1862_v39 = vld [vmem:[#allocation2 + $0x140] sm:$0xff] }
 0x1dc   : > { %v503_v13 = vpop.permute.xlu1 %502 }
 0x1dd   : > { %v708_v56 = vsel %vm249_vm0, %v1853_v43, %v503_v13  ;;  %v631_v42 = vpop.permute.xlu0 %630 }
 0x1de   : > { %v741_v26 = vsel %vm722_vm2, %v708_v56, %v631_v42  ;;  %v4787_v56 = vpop.f32.mrf.mxu1 }
 0x1df   : > { %3276 = vmatprep.mubr.msk.f32.mxu1 %vm1195_vm3, %v741_v26 }
 0x1e0   : > { %v505_v38 = vpop.permute.xlu1 %504 }
 0x1e1   : > { %v2004_v14 = vpop.permute.xlu0 %2003  ;;  %v709_v18 = vsel %vm249_vm0, %v1854_v58, %v505_v38 }
 0x1e2   : > { %v2209_v34 = vsel %vm249_vm0, %v1857_v17, %v2004_v14 }
 0x1e4   : > { %v633_v5 = vpop.permute.xlu1 %632 }
 0x1e5   : > { %v742_v44 = vsel %vm722_vm2, %v709_v18, %v633_v5  ;;  %v2132_v36 = vpop.permute.xlu0 %2131 }
 0x1e6   : > { %v2241_v32 = vsel %vm722_vm2, %v2209_v34, %v2132_v36  ;;  %3277 = vmatmul.mubr.msk.f32.gmra.mxu1 %vm1195_vm3, %v742_v44  ;;  %v4794_v34 = vpop.f32.mrf.mxu1 }
 0x1e7   : > { %3348 = vmatprep.mubr.msk.f32.mxu0 %vm1195_vm3, %v2241_v32 }
 0x1e8   : > { %v2006_v48 = vpop.permute.xlu1 %2005  ;;  %v4799_v32 = vpop.f32.mrf.mxu1 }
 0x1e9   : > { %v2210_v29 = vsel %vm249_vm0, %v1858_v4, %v2006_v48  ;;  %v2134_v59 = vpop.permute.xlu0 %2133 }
 0x1ea   : > { %v2242_v10 = vsel %vm722_vm2, %v2210_v29, %v2134_v59  ;;  %v1863_v29 = vld [vmem:[#allocation2 + $0x150] sm:$0xff] }
 0x1eb   : > { %3349 = vmatmul.mubr.msk.f32.gmra.mxu0 %vm1195_vm3, %v2242_v10 }
 0x1ec   : > { %v507_v43 = vpop.permute.xlu1 %506 }
 0x1ed   : > { %v710_v62 = vsel %vm249_vm0, %v1855_v47, %v507_v43  ;;  %v635_v57 = vpop.permute.xlu0 %634  ;;  %v4805_v43 = vpop.f32.mrf.mxu1 }
 0x1ee   : > { %v743_v27 = vsel %vm722_vm2, %v710_v62, %v635_v57 }
 0x1ef   : > { %3279 = vmatprep.mubr.msk.f32.mxu1 %vm1195_vm3, %v743_v27  ;;  %v4810_v27 = vpop.f32.mrf.mxu1 }
 0x1f0   : > { %v509_v40 = vpop.permute.xlu1 %508 }
 0x1f1   : > { %v2008_v30 = vpop.permute.xlu0 %2007  ;;  %v711_v46 = vsel %vm249_vm0, %v1856_v51, %v509_v40  ;;  %v4777_v51 = vpop.f32.mrf.mxu0 }
 0x1f2   : > { %v2211_v22 = vsel %vm249_vm0, %v1859_v19, %v2008_v30 }
 0x1f3   : > { %v4784_v13 = vpop.f32.mrf.mxu0 }
 0x1f4   : > { %v637_v45 = vpop.permute.xlu1 %636 }
 0x1f5   : > { %v744_v23 = vsel %vm722_vm2, %v711_v46, %v637_v45  ;;  %v2136_v58 = vpop.permute.xlu0 %2135  ;;  %v4791_v14 = vpop.f32.mrf.mxu0  ;;  %v4816_v45 = vld [vmem:[#allocation2 + $0x158] sm:$0xff] }
 0x1f6   : > { %v2243_v50 = vsel %vm722_vm2, %v2211_v22, %v2136_v58  ;;  %3280 = vmatmul.mubr.msk.f32.gmra.mxu1 %vm1195_vm3, %v744_v23  ;;  %v4821_v58 = vpop.f32.mrf.mxu1 }
 0x1f7   : > { %3351 = vmatprep.mubr.msk.f32.mxu0 %vm1195_vm3, %v2243_v50  ;;  %v4796_v5 = vpop.f32.mrf.mxu0 }
 0x1f8   : > { %v2010_v52 = vpop.permute.xlu1 %2009 }
 0x1f9   : > { %v2212_v37 = vsel %vm249_vm0, %v1860_v53, %v2010_v52  ;;  %v2138_v24 = vpop.permute.xlu0 %2137  ;;  %v4803_v59 = vpop.f32.mrf.mxu0 }
 0x1fa   : > { %v2244_v55 = vsel %vm722_vm2, %v2212_v37, %v2138_v24 }
 0x1fb   : > { %3352 = vmatmul.mubr.msk.f32.gmra.mxu0 %vm1195_vm3, %v2244_v55  ;;  %v4807_v62 = vpop.f32.mrf.mxu0  ;;  %v4827_v24 = vpop.f32.mrf.mxu1 }
 0x1fc   : > { %v511_v54 = vpop.permute.xlu1 %510 }
 0x1fd   : > { %v712_v0 = vsel %vm249_vm0, %v1857_v17, %v511_v54  ;;  %v639_v35 = vpop.permute.xlu0 %638  ;;  %v4818_v23 = vpop.f32.mrf.mxu0 }
 0x1fe   : > { %v745_v47 = vsel %vm722_vm2, %v712_v0, %v639_v35 }
 0x1ff   : > { %3282 = vmatprep.mubr.msk.f32.mxu1 %vm1195_vm3, %v745_v47  ;;  %v4823_v52 = vpop.f32.mrf.mxu0 }
 0x200   : > { %v513_v20 = vpop.permute.xlu1 %512 }
 0x201   : > { %v2012_v16 = vpop.permute.xlu0 %2011  ;;  %v713_v15 = vsel %vm249_vm0, %v1858_v4, %v513_v20  ;;  %v4831_v0 = vpop.f32.mrf.mxu0 }
 0x202   : > { %v2213_v60 = vsel %vm249_vm0, %v1861_v21, %v2012_v16  ;;  %v4834_v20 = vpop.f32.mrf.mxu1 }
 0x204   : > { %v641_v31 = vpop.permute.xlu1 %640 }
 0x205   : > { %v746_v28 = vsel %vm722_vm2, %v713_v15, %v641_v31  ;;  %v2140_v33 = vpop.permute.xlu0 %2139 }
 0x206   : > { %v2245_v41 = vsel %vm722_vm2, %v2213_v60, %v2140_v33  ;;  %3283 = vmatmul.mubr.msk.f32.gmra.mxu1 %vm1195_vm3, %v746_v28  ;;  %v4837_v60 = vpop.f32.mrf.mxu0  ;;  %v4842_v28 = vld [vmem:[#allocation2 + $0x168] sm:$0xff] }
 0x207   : > { %3354 = vmatprep.mubr.msk.f32.mxu0 %vm1195_vm3, %v2245_v41 }
 0x208   : > { %v2014_v42 = vpop.permute.xlu1 %2013  ;;  %v4844_v41 = vpop.f32.mrf.mxu0 }
 0x209   : > { %v2214_v26 = vsel %vm249_vm0, %v1862_v39, %v2014_v42  ;;  %v2142_v38 = vpop.permute.xlu0 %2141 }
 0x20a   : > { %v2246_v17 = vsel %vm722_vm2, %v2214_v26, %v2142_v38 }
 0x20b   : > { %3355 = vmatmul.mubr.msk.f32.gmra.mxu0 %vm1195_vm3, %v2246_v17  ;;  %v4840_v15 = vpop.f32.mrf.mxu1 }
 0x20c   : > { %v515_v18 = vpop.permute.xlu1 %514 }
 0x20d   : > { %v714_v44 = vsel %vm249_vm0, %v1859_v19, %v515_v18  ;;  %v643_v36 = vpop.permute.xlu0 %642  ;;  %v4848_v42 = vpop.f32.mrf.mxu1 }
 0x20e   : > { %v747_v4 = vsel %vm722_vm2, %v714_v44, %v643_v36 }
 0x20f   : > { %3285 = vmatprep.mubr.msk.f32.mxu1 %vm1195_vm3, %v747_v4 }
 0x210   : > { %v517_v48 = vpop.permute.xlu1 %516 }
 0x211   : > { %v2016_v10 = vpop.permute.xlu0 %2015  ;;  %v715_v40 = vsel %vm249_vm0, %v1860_v53, %v517_v48  ;;  %v4858_v48 = vld [vmem:[#allocation2 + $0x170] sm:$0xff] }
 0x212   : > { %v2215_v57 = vsel %vm249_vm0, %v1863_v29, %v2016_v10 }
 0x213   : > { %v4851_v17 = vpop.f32.mrf.mxu0 }
 0x214   : > { %v645_v19 = vpop.permute.xlu1 %644 }
 0x215   : > { %v748_v30 = vsel %vm722_vm2, %v715_v40, %v645_v19  ;;  %v2144_v22 = vpop.permute.xlu0 %2143 }
 0x216   : > { %v2247_v46 = vsel %vm722_vm2, %v2215_v57, %v2144_v22  ;;  %3286 = vmatmul.mubr.msk.f32.gmra.mxu1 %vm1195_vm3, %v748_v30  ;;  %v4861_v57 = vpop.f32.mrf.mxu0 }
 0x217   : > { %3357 = vmatprep.mubr.msk.f32.mxu0 %vm1195_vm3, %v2247_v46 }
 0x218   : > { %v2018_v50 = vpop.permute.xlu1 %2017 }
 0x219   : > { %v2216_v53 = vsel %vm249_vm0, %v4816_v45, %v2018_v50  ;;  %v2146_v37 = vpop.permute.xlu0 %2145 }
 0x21a   : > { %v2248_v55 = vsel %vm722_vm2, %v2216_v53, %v2146_v37 }
 0x21b   : > { %3358 = vmatmul.mubr.msk.f32.gmra.mxu0 %vm1195_vm3, %v2248_v55  ;;  %v4854_v36 = vpop.f32.mrf.mxu1 }
 0x21c   : > { %v519_v54 = vpop.permute.xlu1 %518 }
 0x21d   : > { %v716_v35 = vsel %vm249_vm0, %v1861_v21, %v519_v54  ;;  %v647_v47 = vpop.permute.xlu0 %646  ;;  %v4865_v19 = vpop.f32.mrf.mxu1 }
 0x21e   : > { %v749_v16 = vsel %vm722_vm2, %v716_v35, %v647_v47 }
 0x21f   : > { %3288 = vmatprep.mubr.msk.f32.mxu1 %vm1195_vm3, %v749_v16  ;;  %v1867_v16 = vld [vmem:[#allocation2 + $0x180] sm:$0xff] }
 0x220   : > { %v521_v31 = vpop.permute.xlu1 %520 }
 0x221   : > { %v2020_v33 = vpop.permute.xlu0 %2019  ;;  %v717_v26 = vsel %vm249_vm0, %v1862_v39, %v521_v31 }
 0x222   : > { %v2217_v21 = vsel %vm249_vm0, %v4842_v28, %v2020_v33 }
 0x224   : > { %v649_v38 = vpop.permute.xlu1 %648 }
 0x225   : > { %v750_v18 = vsel %vm722_vm2, %v717_v26, %v649_v38  ;;  %v2148_v44 = vpop.permute.xlu0 %2147  ;;  %v4880_v26 = vld [vmem:[%s5155_s2] ss:$0 sm:$0xff] }
 0x226   : > { %v2249_v4 = vsel %vm722_vm2, %v2217_v21, %v2148_v44  ;;  %3289 = vmatmul.mubr.msk.f32.gmra.mxu1 %vm1195_vm3, %v750_v18  ;;  %v4868_v22 = vpop.f32.mrf.mxu0 }
 0x227   : > { %3360 = vmatprep.mubr.msk.f32.mxu0 %vm1195_vm3, %v2249_v4  ;;  %v4886_v4 = vstv %s2659_s27 }
 0x228   : > { %v2022_v10 = vpop.permute.xlu1 %2021  ;;  %v4873_v54 = vpop.f32.mrf.mxu0 }
 0x229   : > { %v2218_v39 = vsel %vm249_vm0, %v4858_v48, %v2022_v10  ;;  %v2150_v40 = vpop.permute.xlu0 %2149 }
 0x22a   : > { %v2250_v30 = vsel %vm722_vm2, %v2218_v39, %v2150_v40  ;;  %v3251_v46 = vpop.f32.mrf.mxu1 }
 0x22b   : > { %3361 = vmatmul.mubr.msk.f32.gmra.mxu0 %vm1195_vm3, %v2250_v30  ;;  %v1685_v31 = vadd.f32 %v3251_v46, %v4771_v49 }
 0x22c   : > { %v523_v50 = vpop.permute.xlu1 %522  ;;  %v1679_v35 = vpop.f32.mrf.mxu1 }
 0x22d   : > { %v718_v53 = vsel %vm249_vm0, %v1863_v29, %v523_v50  ;;  %v651_v37 = vpop.permute.xlu0 %650  ;;  %v1680_v29 = vadd.f32 %v1679_v35, %v4777_v51  ;;  %v1868_v51 = vld [vmem:[#allocation2 + $0x188] sm:$0xff] }
 0x22e   : > { %v751_v55 = vsel %vm722_vm2, %v718_v53, %v651_v37 }
 0x22f   : > { %3291 = vmatprep.mubr.msk.f32.mxu1 %vm1195_vm3, %v751_v55 }
 0x230   : > { %v525_v47 = vpop.permute.xlu1 %524 }
 0x231   : > { %v2024_v33 = vpop.permute.xlu0 %2023  ;;  %v719_v44 = vsel %vm249_vm0, %v4816_v45, %v525_v47 }
 0x232   : > { %v3323_v21 = vpop.f32.mrf.mxu0  ;;  %v2219_v38 = vsel %vm249_vm0, %v1867_v16, %v2024_v33 }
 0x233   : > { %v2589_v18 = vadd.f32 %v3323_v21, %v1685_v31 }
 0x234   : > { %v2429_v10 = vpop.f32.mrf.mxu0  ;;  %v653_v39 = vpop.permute.xlu1 %652 }
 0x235   : > { %v2628_v49 = vadd.f32 %v4880_v26, %v2589_v18  ;;  %v2588_v40 = vadd.f32 %v2429_v10, %v1680_v29  ;;  %v752_v30 = vsel %vm722_vm2, %v719_v44, %v653_v39  ;;  %v2152_v46 = vpop.permute.xlu0 %2151 }
 0x236   : > { %v2251_v50 = vsel %vm722_vm2, %v2219_v38, %v2152_v46  ;;  %3292 = vmatmul.mubr.msk.f32.gmra.mxu1 %vm1195_vm3, %v752_v30  ;;  %v3254_v37 = vpop.f32.mrf.mxu1 }
 0x237   : > { %vm2661_vm4 = vcmp.gt.f32.partialorder %v2628_v49, 0.0  ;;  %v2694_v53 = vmul.f32 %v4886_v4, %v2628_v49  ;;  %v2627_v45 = vadd.f32 %v4880_v26, %v2588_v40  ;;  %3363 = vmatprep.mubr.msk.f32.mxu0 %vm1195_vm3, %v2251_v50  ;;  %v1695_v10 = vadd.f32 %v3254_v37, %v4784_v13 }
 0x238   : > { %v2026_v55 = vpop.permute.xlu1 %2025  ;;  %v1689_v18 = vpop.f32.mrf.mxu1 }
 0x239   : > { %v2726_v35 = vsel %vm2661_vm4, %v2628_v49, %v2694_v53  ;;  %vm2660_vm5 = vcmp.gt.f32.partialorder %v2627_v45, 0.0  ;;  %v2693_v47 = vmul.f32 %v4886_v4, %v2627_v45  ;;  %v2220_v16 = vsel %vm249_vm0, %v1868_v51, %v2026_v55  ;;  %v2154_v31 = vpop.permute.xlu0 %2153  ;;  %v1869_v51 = vld [vmem:[#allocation2 + $0x198] sm:$0xff] }
 0x23a   : > { %v2758_v33 = vadd.f32 %v2726_v35, %v3747_v3  ;;  %v2252_v21 = vsel %vm722_vm2, %v2220_v16, %v2154_v31  ;;  %v1690_v30 = vadd.f32 %v1689_v18, %v4791_v14 }
 0x23b   : > { %v2725_v29 = vsel %vm2660_vm5, %v2627_v45, %v2693_v47  ;;  %3364 = vmatmul.mubr.msk.f32.gmra.mxu0 %vm1195_vm3, %v2252_v21 }
 0x23c   : > { %2790 = vst.msk [vmem:[%s4902_s21 + $0x8] sm:$0xff] %vm249_vm0, %v2758_v33  ;;  %v2757_v38 = vadd.f32 %v2725_v29, %v3741_v1  ;;  %v527_v44 = vpop.permute.xlu1 %526 }
 0x23d   : > { %v720_v3 = vsel %vm249_vm0, %v4842_v28, %v527_v44  ;;  %v655_v39 = vpop.permute.xlu0 %654 }
 0x23e   : > { %2789 = vst.msk [vmem:[%s4902_s21] sm:$0xff] %vm249_vm0, %v2757_v38  ;;  %v753_v49 = vsel %vm722_vm2, %v720_v3, %v655_v39  ;;  %v3326_v40 = vpop.f32.mrf.mxu0  ;;  %v1870_v39 = vld [vmem:[#allocation2 + $0x1a0] sm:$0xff] }
 0x23f   : > { %v2591_v46 = vadd.f32 %v3326_v40, %v1695_v10  ;;  %3294 = vmatprep.mubr.msk.f32.mxu1 %vm1195_vm3, %v753_v49 }
 0x240   : > { %v2439_v50 = vpop.f32.mrf.mxu0  ;;  %v529_v1 = vpop.permute.xlu1 %528 }
 0x241   : > { %v2630_v53 = vadd.f32 %v4880_v26, %v2591_v46  ;;  %v2590_v13 = vadd.f32 %v2439_v50, %v1690_v30  ;;  %v2028_v45 = vpop.permute.xlu0 %2027  ;;  %v721_v14 = vsel %vm249_vm0, %v4858_v48, %v529_v1 }
 0x242   : > { %v2221_v55 = vsel %vm249_vm0, %v1869_v51, %v2028_v45  ;;  %v3257_v35 = vpop.f32.mrf.mxu1 }
 0x243   : > { %vm2663_vm6 = vcmp.gt.f32.partialorder %v2630_v53, 0.0  ;;  %v2696_v28 = vmul.f32 %v4886_v4, %v2630_v53  ;;  %v2629_v37 = vadd.f32 %v4880_v26, %v2590_v13  ;;  %v1705_v3 = vadd.f32 %v3257_v35, %v4796_v5 }
 0x244   : > { %v657_v47 = vpop.permute.xlu1 %656  ;;  %v1699_v44 = vpop.f32.mrf.mxu1 }
 0x245   : > { %v2728_v16 = vsel %vm2663_vm6, %v2630_v53, %v2696_v28  ;;  %vm2662_vm7 = vcmp.gt.f32.partialorder %v2629_v37, 0.0  ;;  %v2695_v31 = vmul.f32 %v4886_v4, %v2629_v37  ;;  %v754_v33 = vsel %vm722_vm2, %v721_v14, %v657_v47  ;;  %v2156_v21 = vpop.permute.xlu0 %2155 }
 0x246   : > { %v2760_v29 = vadd.f32 %v2728_v16, %v3762_v7  ;;  %3295 = vmatmul.mubr.msk.f32.gmra.mxu1 %vm1195_vm3, %v754_v33  ;;  %v2253_v38 = vsel %vm722_vm2, %v2221_v55, %v2156_v21  ;;  %v1700_v7 = vadd.f32 %v1699_v44, %v4803_v59 }
 0x247   : > { %v2727_v18 = vsel %vm2662_vm7, %v2629_v37, %v2695_v31  ;;  %3366 = vmatprep.mubr.msk.f32.mxu0 %vm1195_vm3, %v2253_v38 }
 0x248   : > { %2792 = vst.msk [vmem:[%s4902_s21 + $0x18] sm:$0xff] %vm249_vm0, %v2760_v29  ;;  %v2759_v48 = vadd.f32 %v2727_v18, %v3744_v2  ;;  %v2030_v10 = vpop.permute.xlu1 %2029 }
 0x249   : > { %v2222_v30 = vsel %vm249_vm0, %v1870_v39, %v2030_v10 }
 0x24a   : > { %2791 = vst.msk [vmem:[%s4902_s21 + $0x10] sm:$0xff] %vm249_vm0, %v2759_v48  ;;  %v3329_v49 = vpop.f32.mrf.mxu0 }
 0x24b   : > { %v2593_v40 = vadd.f32 %v3329_v49, %v1705_v3 }
 0x24c   : > { %v2449_v46 = vpop.f32.mrf.mxu0  ;;  %v2158_v50 = vpop.permute.xlu1 %2157 }
 0x24d   : > { %v2632_v1 = vadd.f32 %v4880_v26, %v2593_v40  ;;  %v2592_v51 = vadd.f32 %v2449_v46, %v1700_v7  ;;  %v2254_v2 = vsel %vm722_vm2, %v2222_v30, %v2158_v50 }
 0x24e   : > { %3367 = vmatmul.mubr.msk.f32.gmra.mxu0 %vm1195_vm3, %v2254_v2  ;;  %v3260_v59 = vpop.f32.mrf.mxu1  ;;  %v5214_v2 = vld [vmem:[#allocation12_spill] sm:$0xff] }
 0x24f   : > { %vm2665_vm8 = vcmp.gt.f32.partialorder %v2632_v1, 0.0  ;;  %v2698_v5 = vmul.f32 %v4886_v4, %v2632_v1  ;;  %v2631_v53 = vadd.f32 %v4880_v26, %v2592_v51  ;;  %v1715_v35 = vadd.f32 %v3260_v59, %v4807_v62 }
 0x250   : > { %v1709_v14 = vpop.f32.mrf.mxu1 }
 0x251   : > { %v2730_v13 = vsel %vm2665_vm8, %v2632_v1, %v2698_v5  ;;  %vm2664_vm9 = vcmp.gt.f32.partialorder %v2631_v53, 0.0  ;;  %v2697_v45 = vmul.f32 %v4886_v4, %v2631_v53  ;;  %v1710_v16 = vadd.f32 %v1709_v14, %v4818_v23 }
 0x252   : > { %v2762_v28 = vadd.f32 %v2730_v13, %v3768_v9  ;;  %v5215_v13 = vld [vmem:[#allocation10_spill] sm:$0xff] }
 0x253   : > { %v2729_v37 = vsel %vm2664_vm9, %v2631_v53, %v2697_v45 }
 0x254   : > { %2794 = vst.msk [vmem:[%s4902_s21 + $0x28] sm:$0xff] %vm249_vm0, %v2762_v28  ;;  %v2761_v55 = vadd.f32 %v2729_v37, %v3756_v6 }
 0x256   : > { %2793 = vst.msk [vmem:[%s4902_s21 + $0x20] sm:$0xff] %vm249_vm0, %v2761_v55  ;;  %v3332_v47 = vpop.f32.mrf.mxu0 }
 0x257   : > { %v2595_v31 = vadd.f32 %v3332_v47, %v1715_v35 }
 0x258   : > { %v2459_v33 = vpop.f32.mrf.mxu0 }
 0x259   : > { %v2634_v21 = vadd.f32 %v4880_v26, %v2595_v31  ;;  %v2594_v9 = vadd.f32 %v2459_v33, %v1710_v16  ;;  %v5216_v33 = vld [vmem:[#allocation25_spill] sm:$0xff] }
 0x25a   : > { %v3263_v38 = vpop.f32.mrf.mxu1 }
 0x25b   : > { %vm2667_vm10 = vcmp.gt.f32.partialorder %v2634_v21, 0.0  ;;  %v2700_v29 = vmul.f32 %v4886_v4, %v2634_v21  ;;  %v2633_v6 = vadd.f32 %v4880_v26, %v2594_v9  ;;  %v1725_v3 = vadd.f32 %v3263_v38, %v4823_v52  ;;  %v5217_v9 = vld [vmem:[#allocation24_spill] sm:$0xff] }
 0x25c   : > { %v1719_v10 = vpop.f32.mrf.mxu1 }
 0x25d   : > { %v2732_v18 = vsel %vm2667_vm10, %v2634_v21, %v2700_v29  ;;  %vm2666_vm11 = vcmp.gt.f32.partialorder %v2633_v6, 0.0  ;;  %v2699_v62 = vmul.f32 %v4886_v4, %v2633_v6  ;;  %v1720_v49 = vadd.f32 %v1719_v10, %v4831_v0 }
 0x25e   : > { %v2764_v48 = vadd.f32 %v2732_v18, %v3780_v11 }
 0x25f   : > { %v2731_v44 = vsel %vm2666_vm11, %v2633_v6, %v2699_v62 }
 0x260   : > { %2796 = vst.msk [vmem:[%s4902_s21 + $0x38] sm:$0xff] %vm249_vm0, %v2764_v48  ;;  %v2763_v23 = vadd.f32 %v2731_v44, %v3765_v8 }
 0x262   : > { %2795 = vst.msk [vmem:[%s4902_s21 + $0x30] sm:$0xff] %vm249_vm0, %v2763_v23  ;;  %v3335_v39 = vpop.f32.mrf.mxu0 }
 0x263   : > { %v2597_v7 = vadd.f32 %v3335_v39, %v1725_v3 }
 0x264   : > { %v2469_v40 = vpop.f32.mrf.mxu0 }
 0x265   : > { %v2636_v30 = vadd.f32 %v4880_v26, %v2597_v7  ;;  %v2596_v46 = vadd.f32 %v2469_v40, %v1720_v49 }
 0x266   : > { %v3266_v11 = vpop.f32.mrf.mxu1 }
 0x267   : > { %vm2669_vm12 = vcmp.gt.f32.partialorder %v2636_v30, 0.0  ;;  %v2702_v50 = vmul.f32 %v4886_v4, %v2636_v30  ;;  %v2635_v8 = vadd.f32 %v4880_v26, %v2596_v46  ;;  %v1735_v5 = vadd.f32 %v3266_v11, %v4837_v60 }
 0x268   : > { %v1729_v51 = vpop.f32.mrf.mxu1 }
 0x269   : > { %v2734_v1 = vsel %vm2669_vm12, %v2636_v30, %v2702_v50  ;;  %vm2668_vm13 = vcmp.gt.f32.partialorder %v2635_v8, 0.0  ;;  %v2701_v52 = vmul.f32 %v4886_v4, %v2635_v8  ;;  %v1730_v28 = vadd.f32 %v1729_v51, %v4844_v41  ;;  %v5218_v30 = vld [vmem:[#allocation29_spill] sm:$0xff] }
 0x26a   : > { %v2766_v0 = vadd.f32 %v2734_v1, %v5214_v2 }
 0x26b   : > { %v2733_v53 = vsel %vm2668_vm13, %v2635_v8, %v2701_v52  ;;  %v3338_v59 = vpop.f32.mrf.mxu0 }
 0x26c   : > { %2798 = vst.msk [vmem:[%s4902_s21 + $0x48] sm:$0xff] %vm249_vm0, %v2766_v0  ;;  %v2765_v45 = vadd.f32 %v2733_v53, %v5215_v13  ;;  %v2599_v37 = vadd.f32 %v3338_v59, %v1735_v5 }
 0x26d   : > { %v2479_v55 = vpop.f32.mrf.mxu0 }
 0x26e   : > { %2797 = vst.msk [vmem:[%s4902_s21 + $0x40] sm:$0xff] %vm249_vm0, %v2765_v45  ;;  %v2638_v14 = vadd.f32 %v4880_v26, %v2599_v37  ;;  %v2598_v35 = vadd.f32 %v2479_v55, %v1730_v28  ;;  %v5220_v37 = vld [vmem:[#allocation33_spill] sm:$0xff] }
 0x270   : > { %vm2671_vm14 = vcmp.gt.f32.partialorder %v2638_v14, 0.0  ;;  %v2704_v60 = vmul.f32 %v4886_v4, %v2638_v14  ;;  %v2637_v47 = vadd.f32 %v4880_v26, %v2598_v35 }
 0x272   : > { %v2736_v16 = vsel %vm2671_vm14, %v2638_v14, %v2704_v60  ;;  %vm2670_vm15 = vcmp.gt.f32.partialorder %v2637_v47, 0.0  ;;  %v2703_v31 = vmul.f32 %v4886_v4, %v2637_v47 }
 0x273   : > { %v2768_v21 = vadd.f32 %v2736_v16, %v5216_v33 }
 0x274   : > { %v2735_v41 = vsel %vm2670_vm15, %v2637_v47, %v2703_v31 }
 0x275   : > { %2800 = vst.msk [vmem:[%s4902_s21 + $0x58] sm:$0xff] %vm249_vm0, %v2768_v21  ;;  %v2767_v29 = vadd.f32 %v2735_v41, %v5217_v9 }
 0x276   : > { %v3269_v6 = vpop.f32.mrf.mxu1 }
 0x277   : > { %2799 = vst.msk [vmem:[%s4902_s21 + $0x50] sm:$0xff] %vm249_vm0, %v2767_v29  ;;  %v1745_v18 = vadd.f32 %v3269_v6, %v4851_v17 }
 0x278   : > { %v1739_v38 = vpop.f32.mrf.mxu1 }
 0x279   : > { %v1740_v48 = vadd.f32 %v1739_v38, %v4861_v57  ;;  %v5219_v57 = vld [vmem:[#allocation28_spill] sm:$0xff] }
 0x27b   : > { %v3341_v62 = vpop.f32.mrf.mxu0 }
 0x27c   : > { %v2601_v44 = vadd.f32 %v3341_v62, %v1745_v18  ;;  %v5222_v62 = vld [vmem:[#allocation13_spill] sm:$0xff] }
 0x27d   : > { %v2489_v23 = vpop.f32.mrf.mxu0 }
 0x27e   : > { %v2640_v10 = vadd.f32 %v4880_v26, %v2601_v44  ;;  %v2600_v3 = vadd.f32 %v2489_v23, %v1740_v48 }
 0x280   : > { %vm2673_vm1 = vcmp.gt.f32.partialorder %v2640_v10, 0.0  ;;  %v2706_v39 = vmul.f32 %v4886_v4, %v2640_v10  ;;  %v2639_v49 = vadd.f32 %v4880_v26, %v2600_v3 }
 0x282   : > { %v2738_v7 = vsel %vm2673_vm1, %v2640_v10, %v2706_v39  ;;  %vm2672_vm2 = vcmp.gt.f32.partialorder %v2639_v49, 0.0  ;;  %v2705_v40 = vmul.f32 %v4886_v4, %v2639_v49 }
 0x283   : > { %v2770_v17 = vadd.f32 %v2738_v7, %v5218_v30 }
 0x284   : > { %v2737_v46 = vsel %vm2672_vm2, %v2639_v49, %v2705_v40 }
 0x285   : > { %2802 = vst.msk [vmem:[%s4902_s21 + $0x68] sm:$0xff] %vm249_vm0, %v2770_v17  ;;  %v2769_v11 = vadd.f32 %v2737_v46, %v5219_v57 }
 0x286   : > { %v3272_v50 = vpop.f32.mrf.mxu1 }
 0x287   : > { %2801 = vst.msk [vmem:[%s4902_s21 + $0x60] sm:$0xff] %vm249_vm0, %v2769_v11  ;;  %v1755_v1 = vadd.f32 %v3272_v50, %v4868_v22 }
 0x288   : > { %v1749_v8 = vpop.f32.mrf.mxu1 }
 0x289   : > { %v1750_v51 = vadd.f32 %v1749_v8, %v4873_v54  ;;  %v5221_v54 = vld [vmem:[#allocation32_spill] sm:$0xff]  ;;  %v5224_v8 = vld [vmem:[#allocation15_spill] sm:$0xff] }
 0x28b   : > { %v3344_v52 = vpop.f32.mrf.mxu0 }
 0x28c   : > { %v2603_v2 = vadd.f32 %v3344_v52, %v1755_v1 }
 0x28d   : > { %v2499_v0 = vpop.f32.mrf.mxu0 }
 0x28e   : > { %v2642_v5 = vadd.f32 %v4880_v26, %v2603_v2  ;;  %v2602_v53 = vadd.f32 %v2499_v0, %v1750_v51 }
 0x290   : > { %vm2675_vm3 = vcmp.gt.f32.partialorder %v2642_v5, 0.0  ;;  %v2708_v59 = vmul.f32 %v4886_v4, %v2642_v5  ;;  %v2641_v13 = vadd.f32 %v4880_v26, %v2602_v53 }
 0x292   : > { %v2740_v45 = vsel %vm2675_vm3, %v2642_v5, %v2708_v59  ;;  %vm2674_vm4 = vcmp.gt.f32.partialorder %v2641_v13, 0.0  ;;  %v2707_v28 = vmul.f32 %v4886_v4, %v2641_v13 }
 0x293   : > { %v2772_v22 = vadd.f32 %v2740_v45, %v5220_v37 }
 0x294   : > { %v2739_v55 = vsel %vm2674_vm4, %v2641_v13, %v2707_v28 }
 0x295   : > { %2804 = vst.msk [vmem:[%s4902_s21 + $0x78] sm:$0xff] %vm249_vm0, %v2772_v22  ;;  %v2771_v14 = vadd.f32 %v2739_v55, %v5221_v54 }
 0x296   : > { %v3275_v35 = vpop.f32.mrf.mxu1 }
 0x297   : > { %2803 = vst.msk [vmem:[%s4902_s21 + $0x70] sm:$0xff] %vm249_vm0, %v2771_v14  ;;  %v1765_v47 = vadd.f32 %v3275_v35, %v4764_v12  ;;  %v5226_v14 = vld [vmem:[#allocation17_spill] sm:$0xff] }
 0x298   : > { %v1759_v60 = vpop.f32.mrf.mxu1 }
 0x299   : > { %v1760_v31 = vadd.f32 %v1759_v60, %v4769_v61  ;;  %v5223_v61 = vld [vmem:[#allocation11_spill] sm:$0xff] }
 0x29b   : > { %v3347_v16 = vpop.f32.mrf.mxu0 }
 0x29c   : > { %v2605_v33 = vadd.f32 %v3347_v16, %v1765_v47 }
 0x29d   : > { %v2509_v21 = vpop.f32.mrf.mxu0 }
 0x29e   : > { %v2644_v41 = vadd.f32 %v4880_v26, %v2605_v33  ;;  %v2604_v9 = vadd.f32 %v2509_v21, %v1760_v31 }
 0x2a0   : > { %vm2677_vm5 = vcmp.gt.f32.partialorder %v2644_v41, 0.0  ;;  %v2710_v29 = vmul.f32 %v4886_v4, %v2644_v41  ;;  %v2643_v6 = vadd.f32 %v4880_v26, %v2604_v9 }
 0x2a2   : > { %v2742_v38 = vsel %vm2677_vm5, %v2644_v41, %v2710_v29  ;;  %vm2676_vm6 = vcmp.gt.f32.partialorder %v2643_v6, 0.0  ;;  %v2709_v18 = vmul.f32 %v4886_v4, %v2643_v6 }
 0x2a3   : > { %v2774_v12 = vadd.f32 %v2742_v38, %v5222_v62 }
 0x2a4   : > { %v2741_v48 = vsel %vm2676_vm6, %v2643_v6, %v2709_v18 }
 0x2a5   : > { %2806 = vst.msk [vmem:[%s4902_s21 + $0x88] sm:$0xff] %vm249_vm0, %v2774_v12  ;;  %v2773_v44 = vadd.f32 %v2741_v48, %v5223_v61  ;;  %v5228_v48 = vld [vmem:[#allocation19_spill] sm:$0xff] }
 0x2a6   : > { %v3278_v23 = vpop.f32.mrf.mxu1 }
 0x2a7   : > { %2805 = vst.msk [vmem:[%s4902_s21 + $0x80] sm:$0xff] %vm249_vm0, %v2773_v44  ;;  %v1775_v3 = vadd.f32 %v3278_v23, %v4773_v63 }
 0x2a8   : > { %v1769_v10 = vpop.f32.mrf.mxu1 }
 0x2a9   : > { %v1770_v49 = vadd.f32 %v1769_v10, %v4780_v25  ;;  %v5225_v25 = vld [vmem:[#allocation14_spill] sm:$0xff] }
 0x2ab   : > { %v3350_v39 = vpop.f32.mrf.mxu0 }
 0x2ac   : > { %v2607_v7 = vadd.f32 %v3350_v39, %v1775_v3 }
 0x2ad   : > { %v2519_v40 = vpop.f32.mrf.mxu0 }
 0x2ae   : > { %v2646_v30 = vadd.f32 %v4880_v26, %v2607_v7  ;;  %v2606_v17 = vadd.f32 %v2519_v40, %v1770_v49 }
 0x2b0   : > { %vm2679_vm7 = vcmp.gt.f32.partialorder %v2646_v30, 0.0  ;;  %v2712_v46 = vmul.f32 %v4886_v4, %v2646_v30  ;;  %v2645_v57 = vadd.f32 %v4880_v26, %v2606_v17 }
 0x2b2   : > { %v2744_v11 = vsel %vm2679_vm7, %v2646_v30, %v2712_v46  ;;  %vm2678_vm8 = vcmp.gt.f32.partialorder %v2645_v57, 0.0  ;;  %v2711_v50 = vmul.f32 %v4886_v4, %v2645_v57 }
 0x2b3   : > { %v2776_v63 = vadd.f32 %v2744_v11, %v5224_v8  ;;  %v5230_v8 = vld [vmem:[#allocation21_spill] sm:$0xff] }
 0x2b4   : > { %v2743_v1 = vsel %vm2678_vm8, %v2645_v57, %v2711_v50 }
 0x2b5   : > { %2808 = vst.msk [vmem:[%s4902_s21 + $0x98] sm:$0xff] %vm249_vm0, %v2776_v63  ;;  %v2775_v52 = vadd.f32 %v2743_v1, %v5225_v25 }
 0x2b6   : > { %v3281_v51 = vpop.f32.mrf.mxu1 }
 0x2b7   : > { %2807 = vst.msk [vmem:[%s4902_s21 + $0x90] sm:$0xff] %vm249_vm0, %v2775_v52  ;;  %v1785_v0 = vadd.f32 %v3281_v51, %v4787_v56 }
 0x2b8   : > { %v1779_v2 = vpop.f32.mrf.mxu1 }
 0x2b9   : > { %v1780_v53 = vadd.f32 %v1779_v2, %v4794_v34  ;;  %v5227_v34 = vld [vmem:[#allocation16_spill] sm:$0xff] }
 0x2bb   : > { %v3353_v5 = vpop.f32.mrf.mxu0 }
 0x2bc   : > { %v2609_v59 = vadd.f32 %v3353_v5, %v1785_v0 }
 0x2bd   : > { %v2529_v13 = vpop.f32.mrf.mxu0 }
 0x2be   : > { %v2648_v45 = vadd.f32 %v4880_v26, %v2609_v59  ;;  %v2608_v28 = vadd.f32 %v2529_v13, %v1780_v53 }
 0x2c0   : > { %vm2681_vm9 = vcmp.gt.f32.partialorder %v2648_v45, 0.0  ;;  %v2714_v37 = vmul.f32 %v4886_v4, %v2648_v45  ;;  %v2647_v22 = vadd.f32 %v4880_v26, %v2608_v28 }
 0x2c2   : > { %v2746_v55 = vsel %vm2681_vm9, %v2648_v45, %v2714_v37  ;;  %vm2680_vm10 = vcmp.gt.f32.partialorder %v2647_v22, 0.0  ;;  %v2713_v54 = vmul.f32 %v4886_v4, %v2647_v22 }
 0x2c3   : > { %v2778_v56 = vadd.f32 %v2746_v55, %v5226_v14  ;;  %v5232_v55 = vld [vmem:[#allocation23_spill] sm:$0xff] }
 0x2c4   : > { %v2745_v35 = vsel %vm2680_vm10, %v2647_v22, %v2713_v54 }
 0x2c5   : > { %2810 = vst.msk [vmem:[%s4902_s21 + $0xa8] sm:$0xff] %vm249_vm0, %v2778_v56  ;;  %v2777_v60 = vadd.f32 %v2745_v35, %v5227_v34 }
 0x2c6   : > { %v3284_v47 = vpop.f32.mrf.mxu1 }
 0x2c7   : > { %2809 = vst.msk [vmem:[%s4902_s21 + $0xa0] sm:$0xff] %vm249_vm0, %v2777_v60  ;;  %v1795_v31 = vadd.f32 %v3284_v47, %v4799_v32 }
 0x2c8   : > { %v1789_v16 = vpop.f32.mrf.mxu1 }
 0x2c9   : > { %v1790_v21 = vadd.f32 %v1789_v16, %v4805_v43  ;;  %v5229_v43 = vld [vmem:[#allocation18_spill] sm:$0xff] }
 0x2cb   : > { %v3356_v33 = vpop.f32.mrf.mxu0 }
 0x2cc   : > { %v2611_v41 = vadd.f32 %v3356_v33, %v1795_v31 }
 0x2cd   : > { %v2539_v9 = vpop.f32.mrf.mxu0 }
 0x2ce   : > { %v2650_v29 = vadd.f32 %v4880_v26, %v2611_v41  ;;  %v2610_v6 = vadd.f32 %v2539_v9, %v1790_v21 }
 0x2d0   : > { %vm2683_vm11 = vcmp.gt.f32.partialorder %v2650_v29, 0.0  ;;  %v2716_v38 = vmul.f32 %v4886_v4, %v2650_v29  ;;  %v2649_v18 = vadd.f32 %v4880_v26, %v2610_v6 }
 0x2d2   : > { %v2748_v62 = vsel %vm2683_vm11, %v2650_v29, %v2716_v38  ;;  %vm2682_vm12 = vcmp.gt.f32.partialorder %v2649_v18, 0.0  ;;  %v2715_v12 = vmul.f32 %v4886_v4, %v2649_v18  ;;  %v5234_v38 = vld [vmem:[#allocation27_spill] sm:$0xff] }
 0x2d3   : > { %v2780_v32 = vadd.f32 %v2748_v62, %v5228_v48 }
 0x2d4   : > { %v2747_v61 = vsel %vm2682_vm12, %v2649_v18, %v2715_v12 }
 0x2d5   : > { %2812 = vst.msk [vmem:[%s4902_s21 + $0xb8] sm:$0xff] %vm249_vm0, %v2780_v32  ;;  %v2779_v44 = vadd.f32 %v2747_v61, %v5229_v43 }
 0x2d6   : > { %v3287_v23 = vpop.f32.mrf.mxu1 }
 0x2d7   : > { %2811 = vst.msk [vmem:[%s4902_s21 + $0xb0] sm:$0xff] %vm249_vm0, %v2779_v44  ;;  %v1805_v3 = vadd.f32 %v3287_v23, %v4810_v27 }
 0x2d8   : > { %v1799_v10 = vpop.f32.mrf.mxu1 }
 0x2d9   : > { %v1800_v49 = vadd.f32 %v1799_v10, %v4821_v58  ;;  %v5231_v58 = vld [vmem:[#allocation20_spill] sm:$0xff] }
 0x2db   : > { %v3359_v39 = vpop.f32.mrf.mxu0 }
 0x2dc   : > { %v2613_v7 = vadd.f32 %v3359_v39, %v1805_v3 }
 0x2dd   : > { %v2549_v40 = vpop.f32.mrf.mxu0 }
 0x2de   : > { %v2652_v30 = vadd.f32 %v4880_v26, %v2613_v7  ;;  %v2612_v17 = vadd.f32 %v2549_v40, %v1800_v49  ;;  %v5236_v7 = vld [vmem:[#allocation31_spill] sm:$0xff] }
 0x2e0   : > { %vm2685_vm13 = vcmp.gt.f32.partialorder %v2652_v30, 0.0  ;;  %v2718_v46 = vmul.f32 %v4886_v4, %v2652_v30  ;;  %v2651_v57 = vadd.f32 %v4880_v26, %v2612_v17 }
 0x2e2   : > { %v2750_v11 = vsel %vm2685_vm13, %v2652_v30, %v2718_v46  ;;  %vm2684_vm14 = vcmp.gt.f32.partialorder %v2651_v57, 0.0  ;;  %v2717_v50 = vmul.f32 %v4886_v4, %v2651_v57 }
 0x2e3   : > { %v2782_v27 = vadd.f32 %v2750_v11, %v5230_v8 }
 0x2e4   : > { %v2749_v63 = vsel %vm2684_vm14, %v2651_v57, %v2717_v50 }
 0x2e5   : > { %2814 = vst.msk [vmem:[%s4902_s21 + $0xc8] sm:$0xff] %vm249_vm0, %v2782_v27  ;;  %v2781_v1 = vadd.f32 %v2749_v63, %v5231_v58 }
 0x2e6   : > { %v3290_v25 = vpop.f32.mrf.mxu1 }
 0x2e7   : > { %2813 = vst.msk [vmem:[%s4902_s21 + $0xc0] sm:$0xff] %vm249_vm0, %v2781_v1  ;;  %v1815_v51 = vadd.f32 %v3290_v25, %v4827_v24 }
 0x2e8   : > { %v1809_v52 = vpop.f32.mrf.mxu1 }
 0x2e9   : > { %v1810_v0 = vadd.f32 %v1809_v52, %v4834_v20  ;;  %v5233_v20 = vld [vmem:[#allocation22_spill] sm:$0xff] }
 0x2eb   : > { %v3362_v2 = vpop.f32.mrf.mxu0 }
 0x2ec   : > { %v2615_v5 = vadd.f32 %v3362_v2, %v1815_v51 }
 0x2ed   : > { %v2559_v53 = vpop.f32.mrf.mxu0 }
 0x2ee   : > { %v2654_v59 = vadd.f32 %v4880_v26, %v2615_v5  ;;  %v2614_v13 = vadd.f32 %v2559_v53, %v1810_v0 }
 0x2f0   : > { %vm2687_vm15 = vcmp.gt.f32.partialorder %v2654_v59, 0.0  ;;  %v2720_v45 = vmul.f32 %v4886_v4, %v2654_v59  ;;  %v2653_v28 = vadd.f32 %v4880_v26, %v2614_v13 }
 0x2f2   : > { %v2752_v37 = vsel %vm2687_vm15, %v2654_v59, %v2720_v45  ;;  %vm2686_vm1 = vcmp.gt.f32.partialorder %v2653_v28, 0.0  ;;  %v2719_v22 = vmul.f32 %v4886_v4, %v2653_v28 }
 0x2f3   : > { %v2784_v24 = vadd.f32 %v2752_v37, %v5232_v55 }
 0x2f4   : > { %v2751_v54 = vsel %vm2686_vm1, %v2653_v28, %v2719_v22 }
 0x2f5   : > { %2816 = vst.msk [vmem:[%s4902_s21 + $0xd8] sm:$0xff] %vm249_vm0, %v2784_v24  ;;  %v2783_v14 = vadd.f32 %v2751_v54, %v5233_v20 }
 0x2f6   : > { %v3293_v56 = vpop.f32.mrf.mxu1 }
 0x2f7   : > { %2815 = vst.msk [vmem:[%s4902_s21 + $0xd0] sm:$0xff] %vm249_vm0, %v2783_v14  ;;  %v1825_v34 = vadd.f32 %v3293_v56, %v4840_v15 }
 0x2f8   : > { %v1819_v35 = vpop.f32.mrf.mxu1 }
 0x2f9   : > { %v1820_v47 = vadd.f32 %v1819_v35, %v4848_v42  ;;  %v5235_v42 = vld [vmem:[#allocation26_spill] sm:$0xff] }
 0x2fb   : > { %v3365_v60 = vpop.f32.mrf.mxu0 }
 0x2fc   : > { %v2617_v16 = vadd.f32 %v3365_v60, %v1825_v34 }
 0x2fd   : > { %v2569_v31 = vpop.f32.mrf.mxu0 }
 0x2fe   : > { %v2656_v33 = vadd.f32 %v4880_v26, %v2617_v16  ;;  %v2616_v21 = vadd.f32 %v2569_v31, %v1820_v47 }
 0x300   : > { %vm2689_vm2 = vcmp.gt.f32.partialorder %v2656_v33, 0.0  ;;  %v2722_v41 = vmul.f32 %v4886_v4, %v2656_v33  ;;  %v2655_v9 = vadd.f32 %v4880_v26, %v2616_v21 }
 0x302   : > { %v2754_v29 = vsel %vm2689_vm2, %v2656_v33, %v2722_v41  ;;  %vm2688_vm3 = vcmp.gt.f32.partialorder %v2655_v9, 0.0  ;;  %v2721_v6 = vmul.f32 %v4886_v4, %v2655_v9 }
 0x303   : > { %v2786_v15 = vadd.f32 %v2754_v29, %v5234_v38 }
 0x304   : > { %v2753_v18 = vsel %vm2688_vm3, %v2655_v9, %v2721_v6 }
 0x305   : > { %2818 = vst.msk [vmem:[%s4902_s21 + $0xe8] sm:$0xff] %vm249_vm0, %v2786_v15  ;;  %v2785_v62 = vadd.f32 %v2753_v18, %v5235_v42 }
 0x306   : > { %v3296_v12 = vpop.f32.mrf.mxu1 }
 0x307   : > { %2817 = vst.msk [vmem:[%s4902_s21 + $0xe0] sm:$0xff] %vm249_vm0, %v2785_v62  ;;  %v1835_v32 = vadd.f32 %v3296_v12, %v4854_v36 }
 0x308   : > { %v1829_v48 = vpop.f32.mrf.mxu1 }
 0x309   : > { %v1830_v43 = vadd.f32 %v1829_v48, %v4865_v19 }
 0x30e   : > { %v3368_v61 = vpop.f32.mrf.mxu0 }
 0x30f   : > { %v2619_v44 = vadd.f32 %v3368_v61, %v1835_v32 }
 0x310   : > { %v2579_v23 = vpop.f32.mrf.mxu0 }
 0x311   : > { %v2658_v10 = vadd.f32 %v4880_v26, %v2619_v44  ;;  %v2618_v3 = vadd.f32 %v2579_v23, %v1830_v43 }
 0x313   : > { %vm2691_vm4 = vcmp.gt.f32.partialorder %v2658_v10, 0.0  ;;  %v2724_v39 = vmul.f32 %v4886_v4, %v2658_v10  ;;  %v2657_v49 = vadd.f32 %v4880_v26, %v2618_v3  ;;  %v5237_v26 = vld [vmem:[#allocation30_spill] sm:$0xff] }
 0x315   : > { %v2756_v36 = vsel %vm2691_vm4, %v2658_v10, %v2724_v39  ;;  %vm2690_vm5 = vcmp.gt.f32.partialorder %v2657_v49, 0.0  ;;  %v2723_v19 = vmul.f32 %v4886_v4, %v2657_v49 }
 0x316   : > { %v2788_v40 = vadd.f32 %v2756_v36, %v5236_v7 }
 0x317   : > { %v2755_v30 = vsel %vm2690_vm5, %v2657_v49, %v2723_v19 }
 0x318   : > { %2820 = vst.msk [vmem:[%s4902_s21 + $0xf8] sm:$0xff] %vm249_vm0, %v2788_v40  ;;  %v2787_v17 = vadd.f32 %v2755_v30, %v5237_v26 }
 0x31a   : > { %2819 = vst.msk [vmem:[%s4902_s21 + $0xf0] sm:$0xff] %vm249_vm0, %v2787_v17 }
 0x31b   : > { %3487 = shalt.err (!%p3484_p10)
}
 0x31c   : > { %s3488_s15 = scalar_lea.hbm %s5103_s26, 4096  ;;  %s3492_s12 = scalar_lea.hbm %s5157_s4, 8192 }
 0x31d   : > { %p3489_p0 = scmp.ne.s32.totalorder %s5103_s26, %s3488_s15  ;;  %p3493_p1 = scmp.lt.s32.totalorder %s5103_s26, %s5157_s4 }
 0x31e   : > { %p3494_p3 = scmp.lt.s32.totalorder %s3492_s12, %s3488_s15 }
 0x31f   : > { %p3490_p2 = pnand %p3489_p0, %p5238_p12 }
 0x320   : > { %p3495_p6 = por %p3494_p3, %p3493_p1 }
 0x321   : > { %p3491_p9 = pneg %p3490_p2 }
 0x323   : > { %p3496_p11 = pnand %p3495_p6, %p3491_p9 }
 0x325   : > { %3499 = shalt.err (!%p3496_p11)
}
 0x326   : > { %s3547_s13 = smov 128   ;;  %s3548_s21 = smov 8  }
 0x327   : > { %3395 = dma.vmem_to_hbm [thread:$0]  (%p5238_p12), %s5105_s16, 4096, %s5103_s26, %s2822_s3, %s3547_s13, %s3547_s13, %s3548_s21  }
 0x328 PF: > { %s2850_s14 = sand.u32 1, %s3526_s17   ;;  %p5239_p13 = scmp.ne.s32.totalorder %s5187_s29, 0 }
 0x329   : > { %p5240_p4 = scmp.ge.s32.totalorder %s3538_s20, 2  ;;  %s2851_s23 = scalar_lea.sflag [#allocation6], %s2850_s14 }
 0x32b   : > { %p3402_p5 = pnand %p5240_p4, %p5239_p13 }
 0x32d   : > { %p3403_p7 = pneg %p3402_p5 }
 0x32f   : > { %3521 = dma.done.wait (%p3403_p7), %s2851_s23, 4096  }
 0x330   : > { %3523 = vsyncadd (%p3403_p7), %s2851_s23, 4294963200  ;;  %p18_p8 = scmp.ge.s32.totalorder %s3602_s22, 4   ;;  %s5241_s17 = smov %s3530_s18 }
 0x331   : > { %s5242_s18 = smov %s3534_s19  ;;  %s5243_s19 = smov %s3614_s25 }
 0x332   : > { %s5244_s20 = smov %s3602_s22  ;;  %20 = sbr.rel (!%p18_p8) target bundleno = 7 (0x7), region = 83 }
 0x337   :  { %2856 = vsyncpa [#allocation5], 1 }
 0x338   :  { %2858 = vsyncpa [#allocation5 + $0x1], 1 }
 0x339   :  { %2859 = vsyncpa [#allocation6], 1 }
 0x33a   :  { %2861 = vsyncpa [#allocation6 + $0x1], 1 }

</bundles_post_ra>
